<compile_context>
chip_gen: v6e
topology: v6e:2x2x1
jax: 0.10.0
libtpu: 0.0.40
codegen_flags: <defaults>
</compile_context>

<pallas_src>
import jax
import jax.numpy as jnp
from jax.experimental import pallas as pl
from jax.experimental.pallas import tpu as pltpu

# ---- synthetic BERT config (small) -----------------------------------------
VOCAB = 100
MAX_POS = 64
TYPE_VOCAB = 2
HIDDEN = 32
HEADS = 4
HEAD_DIM = HIDDEN // HEADS
INTER = 64
LAYERS = 3          # hidden_states has LAYERS+1 entries; [-3] = output of layer LAYERS-2
SEQ = 8
LN_EPS = 1e-12

# Number of encoder layers the result actually depends on.
NUM_RUN_LAYERS = LAYERS - 2
assert NUM_RUN_LAYERS >= 1

_ATTN_SCALE = 1.0 / (HEAD_DIM ** 0.5)
_SQRT1_2 = 0.7071067811865476
_NEG_INF = -1e9     # HF uses -10000/dtype-min; numerically equivalent for softmax.


# ---------------------------------------------------------------------------
# In-kernel helpers (all f32 elementwise math)
# ---------------------------------------------------------------------------
def _layer_norm(x, gamma, beta):
    mean = jnp.mean(x, axis=-1, keepdims=True)
    var = jnp.mean(jnp.square(x - mean), axis=-1, keepdims=True)
    return (x - mean) * jax.lax.rsqrt(var + LN_EPS) * gamma + beta


def _erf(x):
    # Abramowitz & Stegun 7.1.26 polynomial approximation of erf, |err| < 1.5e-7.
    a1, a2, a3, a4, a5 = (0.254829592, -0.284496736, 1.421413741,
                          -1.453152027, 1.061405429)
    p = 0.3275911
    sgn = jnp.where(x < 0.0, -1.0, 1.0)
    z = jnp.abs(x)
    t = 1.0 / (1.0 + p * z)
    poly = ((((a5 * t + a4) * t + a3) * t + a2) * t + a1) * t
    return sgn * (1.0 - poly * jnp.exp(-z * z))


def _gelu(x):
    # Exact (erf-based) GELU, matching HF BERT's "gelu" activation.
    return 0.5 * x * (1.0 + _erf(x * _SQRT1_2))


# ---------------------------------------------------------------------------
# Fused encoder kernel: grid over layers, hidden state carried in VMEM scratch.
# ---------------------------------------------------------------------------
def _encoder_kernel(ids_ref, tts_ref, am_ref,                      # SMEM scalar prefetch
                    word_ref, pos_ref, type_ref, eg_ref, eb_ref,   # shared VMEM inputs
                    wqkv_ref, bqkv_ref, wo_ref, bo_ref,            # per-layer weights
                    ln1g_ref, ln1b_ref, w1_ref, b1_ref,
                    w2_ref, b2_ref, ln2g_ref, ln2b_ref,
                    out_ref,                                       # (SEQ-2, HIDDEN)
                    h_ref, mask_ref):                              # VMEM scratch
    layer = pl.program_id(0)

    # --- step 0: fused embedding gather + LayerNorm + additive-mask build ----
    @pl.when(layer == 0)
    def _():
        # Embedding tables are (N, 1, HIDDEN): dynamic leading-axis row loads,
        # no sublane/lane shuffles.
        for s in range(SEQ):
            wid = ids_ref[s]
            tid = tts_ref[s]
            h_ref[pl.ds(s, 1), :] = (word_ref[wid] + pos_ref[s] + type_ref[tid])
        h_ref[...] = _layer_norm(h_ref[...], eg_ref[...], eb_ref[...])

        # Additive attention mask built from SMEM ints: 0 where attended, -1e9 where not.
        lane = jax.lax.broadcasted_iota(jnp.int32, (1, 1, SEQ), 2)
        mvec = jnp.zeros((1, 1, SEQ), jnp.float32)
        for j in range(SEQ):
            add_j = (1 - am_ref[j]).astype(jnp.float32) * _NEG_INF
            mvec = jnp.where(lane == j, add_j, mvec)
        mask_ref[...] = mvec

    h = h_ref[...]                                        # (SEQ, HIDDEN) f32 layer carry

    # --- head-major fused QKV projection: one batched matmul, no lane slices ---
    hb = jnp.broadcast_to(h[None, :, :], (3 * HEADS, SEQ, HIDDEN))
    qkv = jax.lax.dot_general(
        hb, wqkv_ref[0], (((2,), (1,)), ((0,), (0,))),
        preferred_element_type=jnp.float32) + bqkv_ref[0]          # (3*HEADS, S, HD)
    q = qkv[0:HEADS]                                               # leading-axis slices
    k = qkv[HEADS:2 * HEADS]
    v = qkv[2 * HEADS:3 * HEADS]

    # --- multi-head self-attention, batched over the leading head axis ---------
    scores = jax.lax.dot_general(
        q, k, (((2,), (2,)), ((0,), (0,))),
        preferred_element_type=jnp.float32) * _ATTN_SCALE          # (HEADS, S, S)
    scores = scores + mask_ref[...]                                # single broadcast add
    m = jnp.max(scores, axis=-1, keepdims=True)
    p = jnp.exp(scores - m)
    denom = jnp.sum(p, axis=-1, keepdims=True)
    p = p * pl.reciprocal(denom, approx=True)                      # EUP reciprocal
    ctx = jax.lax.dot_general(
        p, v, (((2,), (1,)), ((0,), (0,))),
        preferred_element_type=jnp.float32)                        # (HEADS, S, HD)

    # --- output projection with head-major weights (no concat) + residual + LN --
    attn_heads = jax.lax.dot_general(
        ctx, wo_ref[0], (((2,), (1,)), ((0,), (0,))),
        preferred_element_type=jnp.float32)                        # (HEADS, S, HIDDEN)
    attn_out = jnp.sum(attn_heads, axis=0) + bo_ref[0]             # (S, HIDDEN)
    h1 = _layer_norm(attn_out + h, ln1g_ref[0], ln1b_ref[0])

    # --- feed-forward (erf GELU) + residual + LayerNorm -------------------------
    inter = jnp.dot(h1, w1_ref[0], preferred_element_type=jnp.float32) + b1_ref[0]
    inter = _gelu(inter)
    ffn = jnp.dot(inter, w2_ref[0], preferred_element_type=jnp.float32) + b2_ref[0]
    h2 = _layer_norm(ffn + h1, ln2g_ref[0], ln2b_ref[0])

    h_ref[...] = h2                    # layer carry stays resident in VMEM scratch

    # Write the result (rows 1..SEQ-2, i.e. the fused [1:-1] slice) once, at the end.
    @pl.when(layer == pl.num_programs(0) - 1)
    def _():
        out_ref[...] = h_ref[pl.ds(1, SEQ - 2), :]


# ---------------------------------------------------------------------------
# BlockSpec helpers
# ---------------------------------------------------------------------------
def _full_spec(a):
    nd = a.ndim
    return pl.BlockSpec(a.shape, lambda l, *_: (0,) * nd)


def _layer_spec(a):
    nd = a.ndim
    return pl.BlockSpec((1,) + a.shape[1:], lambda l, *_: (l,) + (0,) * (nd - 1))


# ---------------------------------------------------------------------------
# Forward (matches BertModel.forward semantics): everything in one pallas_call.
# ---------------------------------------------------------------------------
def bert_forward(packed, input_ids, token_type_ids, attention_mask):
    # input_ids / token_type_ids / attention_mask: (1, SEQ) ints (batch fixed to 1,
    # as in the traced model); flattened (free reshape) for scalar prefetch.
    ids = input_ids.reshape(-1).astype(jnp.int32)
    tts = token_type_ids.reshape(-1).astype(jnp.int32)
    am = attention_mask.reshape(-1).astype(jnp.int32)

    shared = [packed["word_emb"], packed["pos_emb"], packed["type_emb"],
              packed["emb_ln_g"], packed["emb_ln_b"]]
    per_layer = [packed["wqkv"], packed["bqkv"], packed["wo"], packed["bo"],
                 packed["ln1_g"], packed["ln1_b"], packed["w1"], packed["b1"],
                 packed["w2"], packed["b2"], packed["ln2_g"], packed["ln2_b"]]

    n_run = packed["wqkv"].shape[0]

    # hidden_states[-3] == output of encoder layer NUM_RUN_LAYERS; later layers are
    # never computed.  torch.cat of a single tensor is identity; [0] is the batch=1
    # handling; [1:-1] is fused into the kernel's final write.
    return pl.pallas_call(
        _encoder_kernel,
        out_shape=jax.ShapeDtypeStruct((SEQ - 2, HIDDEN), jnp.float32),
        grid_spec=pltpu.PrefetchScalarGridSpec(
            num_scalar_prefetch=3,
            grid=(n_run,),
            in_specs=([_full_spec(a) for a in shared]
                      + [_layer_spec(a) for a in per_layer]),
            out_specs=pl.BlockSpec((SEQ - 2, HIDDEN), lambda l, *_: (0, 0)),
            scratch_shapes=[pltpu.VMEM((SEQ, HIDDEN), jnp.float32),   # hidden-state carry
                            pltpu.VMEM((1, 1, SEQ), jnp.float32)]),   # additive mask
        compiler_params=pltpu.CompilerParams(
            # Layer axis is a sequential carry (hidden state lives in scratch).
            dimension_semantics=("arbitrary",)),
    )(ids, tts, am, *shared, *per_layer)


# ---------------------------------------------------------------------------
# Parameters (deterministic init, BERT-like 0.02 normal) + head-major packing
# ---------------------------------------------------------------------------
def init_params(key):
    keys = iter(jax.random.split(key, 8 + LAYERS * 8))

    def nrm(shape):
        return jax.random.normal(next(keys), shape, jnp.float32) * 0.02

    params = {
        "word_emb": nrm((VOCAB, HIDDEN)),
        "pos_emb": nrm((MAX_POS, HIDDEN)),
        "type_emb": nrm((TYPE_VOCAB, HIDDEN)),
        "emb_ln_g": jnp.ones((HIDDEN,), jnp.float32),
        "emb_ln_b": jnp.zeros((HIDDEN,), jnp.float32),
        "layers": [],
    }
    for _ in range(LAYERS):
        params["layers"].append({
            "wq": nrm((HIDDEN, HIDDEN)), "bq": jnp.zeros((HIDDEN,), jnp.float32),
            "wk": nrm((HIDDEN, HIDDEN)), "bk": jnp.zeros((HIDDEN,), jnp.float32),
            "wv": nrm((HIDDEN, HIDDEN)), "bv": jnp.zeros((HIDDEN,), jnp.float32),
            "wo": nrm((HIDDEN, HIDDEN)), "bo": jnp.zeros((HIDDEN,), jnp.float32),
            "ln1_g": jnp.ones((HIDDEN,), jnp.float32),
            "ln1_b": jnp.zeros((HIDDEN,), jnp.float32),
            "w1": nrm((HIDDEN, INTER)), "b1": jnp.zeros((INTER,), jnp.float32),
            "w2": nrm((INTER, HIDDEN)), "b2": jnp.zeros((HIDDEN,), jnp.float32),
            "ln2_g": jnp.ones((HIDDEN,), jnp.float32),
            "ln2_b": jnp.zeros((HIDDEN,), jnp.float32),
        })
    return params


def pack_params(params):
    """Keep only the NUM_RUN_LAYERS needed layers; repack attention weights head-major
    (heads on a leading, non-lane axis) so the kernel never lane-slices.  All f32."""
    layers = params["layers"][:NUM_RUN_LAYERS]

    def head_major_in(w):
        # (HIDDEN, HIDDEN), used as x @ w -> per-head (HEADS, HIDDEN, HEAD_DIM).
        return w.reshape(HIDDEN, HEADS, HEAD_DIM).transpose(1, 0, 2)

    wqkv = jnp.stack([
        jnp.concatenate([head_major_in(l["wq"]),
                         head_major_in(l["wk"]),
                         head_major_in(l["wv"])], axis=0)
        for l in layers], axis=0)                                   # (L, 3*HEADS, H, HD)
    bqkv = jnp.stack([
        jnp.concatenate([l["bq"].reshape(HEADS, 1, HEAD_DIM),
                         l["bk"].reshape(HEADS, 1, HEAD_DIM),
                         l["bv"].reshape(HEADS, 1, HEAD_DIM)], axis=0)
        for l in layers], axis=0)                                   # (L, 3*HEADS, 1, HD)
    wo = jnp.stack([l["wo"].reshape(HEADS, HEAD_DIM, HIDDEN) for l in layers],
                   axis=0)                                          # (L, HEADS, HD, H)

    def stack(name):
        return jnp.stack([l[name] for l in layers], axis=0)

    return {
        # Embedding tables reshaped to (N, 1, HIDDEN) for leading-axis dynamic gather.
        "word_emb": params["word_emb"].reshape(VOCAB, 1, HIDDEN),
        "pos_emb": params["pos_emb"].reshape(MAX_POS, 1, HIDDEN),
        "type_emb": params["type_emb"].reshape(TYPE_VOCAB, 1, HIDDEN),
        "emb_ln_g": params["emb_ln_g"].reshape(1, HIDDEN),
        "emb_ln_b": params["emb_ln_b"].reshape(1, HIDDEN),
        "wqkv": wqkv,
        "bqkv": bqkv,
        "wo": wo,
        "bo": stack("bo")[:, None, :],
        "ln1_g": stack("ln1_g")[:, None, :],
        "ln1_b": stack("ln1_b")[:, None, :],
        "w1": stack("w1"),
        "b1": stack("b1")[:, None, :],
        "w2": stack("w2"),
        "b2": stack("b2")[:, None, :],
        "ln2_g": stack("ln2_g")[:, None, :],
        "ln2_b": stack("ln2_b")[:, None, :],
    }


if __name__ == "__main__":
    key = jax.random.PRNGKey(0)
    pkey, ikey = jax.random.split(key)
    params = init_params(pkey)
    packed = pack_params(params)   # stack + head-major repack once, outside jit

    input_ids = jax.random.randint(ikey, (1, SEQ), 0, VOCAB, dtype=jnp.int32)
    token_type_ids = jnp.zeros((1, SEQ), dtype=jnp.int32)
    attention_mask = jnp.ones((1, SEQ), dtype=jnp.int32)

    fwd = jax.jit(bert_forward)
    out = fwd(packed, input_ids, token_type_ids, attention_mask)
    out = jax.block_until_ready(out)

    assert out.shape == (SEQ - 2, HIDDEN), out.shape
    assert bool(jnp.all(jnp.isfinite(out)))
    print("KERNEL_OK")
</pallas_src>

<mosaic_0001>
module attributes {stable_mosaic.version = 11 : i64} {
  func.func @_encoder_kernel(%arg0: i32, %arg1: memref<8xi32, #tpu.memory_space<smem>>, %arg2: memref<8xi32, #tpu.memory_space<smem>>, %arg3: memref<8xi32, #tpu.memory_space<smem>>, %arg4: memref<100x1x32xf32, #tpu.memory_space<vmem>>, %arg5: memref<64x1x32xf32, #tpu.memory_space<vmem>>, %arg6: memref<2x1x32xf32, #tpu.memory_space<vmem>>, %arg7: memref<1x32xf32, #tpu.memory_space<vmem>>, %arg8: memref<1x32xf32, #tpu.memory_space<vmem>>, %arg9: memref<1x12x32x8xf32, #tpu.memory_space<vmem>>, %arg10: memref<1x12x1x8xf32, #tpu.memory_space<vmem>>, %arg11: memref<1x4x8x32xf32, #tpu.memory_space<vmem>>, %arg12: memref<1x1x32xf32, #tpu.memory_space<vmem>>, %arg13: memref<1x1x32xf32, #tpu.memory_space<vmem>>, %arg14: memref<1x1x32xf32, #tpu.memory_space<vmem>>, %arg15: memref<1x32x64xf32, #tpu.memory_space<vmem>>, %arg16: memref<1x1x64xf32, #tpu.memory_space<vmem>>, %arg17: memref<1x64x32xf32, #tpu.memory_space<vmem>>, %arg18: memref<1x1x32xf32, #tpu.memory_space<vmem>>, %arg19: memref<1x1x32xf32, #tpu.memory_space<vmem>>, %arg20: memref<1x1x32xf32, #tpu.memory_space<vmem>>, %arg21: memref<6x32xf32, #tpu.memory_space<vmem>>, %arg22: memref<8x32xf32, #tpu.memory_space<vmem>>, %arg23: memref<1x1x8xf32, #tpu.memory_space<vmem>>) attributes {dimension_semantics = [#tpu.dimension_semantics<arbitrary>], iteration_bounds = array<i64: 1>, scalar_prefetch = 3 : i64, scratch_operands = 2 : i64, tpu.core_type = #tpu.core_type<tc>, window_params = [{pipeline_mode = #tpu.pipeline_mode<synchronous>, transform_indices = @transform_0, window_bounds = array<i64: 100, 1, 32>}, {pipeline_mode = #tpu.pipeline_mode<synchronous>, transform_indices = @transform_1, window_bounds = array<i64: 64, 1, 32>}, {pipeline_mode = #tpu.pipeline_mode<synchronous>, transform_indices = @transform_2, window_bounds = array<i64: 2, 1, 32>}, {pipeline_mode = #tpu.pipeline_mode<synchronous>, transform_indices = @transform_3, window_bounds = array<i64: 1, 32>}, {pipeline_mode = #tpu.pipeline_mode<synchronous>, transform_indices = @transform_4, window_bounds = array<i64: 1, 32>}, {transform_indices = @transform_5, window_bounds = array<i64: 1, 12, 32, 8>}, {transform_indices = @transform_6, window_bounds = array<i64: 1, 12, 1, 8>}, {transform_indices = @transform_7, window_bounds = array<i64: 1, 4, 8, 32>}, {transform_indices = @transform_8, window_bounds = array<i64: 1, 1, 32>}, {transform_indices = @transform_9, window_bounds = array<i64: 1, 1, 32>}, {transform_indices = @transform_10, window_bounds = array<i64: 1, 1, 32>}, {transform_indices = @transform_11, window_bounds = array<i64: 1, 32, 64>}, {transform_indices = @transform_12, window_bounds = array<i64: 1, 1, 64>}, {transform_indices = @transform_13, window_bounds = array<i64: 1, 64, 32>}, {transform_indices = @transform_14, window_bounds = array<i64: 1, 1, 32>}, {transform_indices = @transform_15, window_bounds = array<i64: 1, 1, 32>}, {transform_indices = @transform_16, window_bounds = array<i64: 1, 1, 32>}, {pipeline_mode = #tpu.pipeline_mode<synchronous>, transform_indices = @transform_17, window_bounds = array<i64: 6, 32>}]} {
    %c0_i32 = arith.constant 0 : i32
    %0 = arith.cmpi eq, %arg0, %c0_i32 : i32
    %1 = arith.extui %0 : i1 to i32
    %c0_i32_0 = arith.constant 0 : i32
    %2 = arith.cmpi ne, %1, %c0_i32_0 : i32
    scf.if %2 {
      %c0_83 = arith.constant 0 : index
      %155 = memref.load %arg1[%c0_83] : memref<8xi32, #tpu.memory_space<smem>>
      %c0_84 = arith.constant 0 : index
      %156 = memref.load %arg2[%c0_84] : memref<8xi32, #tpu.memory_space<smem>>
      %157 = arith.index_cast %155 : i32 to index
      %c0_85 = arith.constant 0 : index
      %c0_86 = arith.constant 0 : index
      %158 = vector.load %arg4[%157, %c0_85, %c0_86] : memref<100x1x32xf32, #tpu.memory_space<vmem>>, vector<1x1x32xf32>
      %159 = vector.shape_cast %158 : vector<1x1x32xf32> to vector<1x32xf32>
      %c0_87 = arith.constant 0 : index
      %c0_88 = arith.constant 0 : index
      %c0_89 = arith.constant 0 : index
      %160 = vector.load %arg5[%c0_87, %c0_88, %c0_89] : memref<64x1x32xf32, #tpu.memory_space<vmem>>, vector<1x1x32xf32>
      %161 = vector.shape_cast %160 : vector<1x1x32xf32> to vector<1x32xf32>
      %162 = arith.addf %159, %161 : vector<1x32xf32>
      %163 = arith.index_cast %156 : i32 to index
      %c0_90 = arith.constant 0 : index
      %c0_91 = arith.constant 0 : index
      %164 = vector.load %arg6[%163, %c0_90, %c0_91] : memref<2x1x32xf32, #tpu.memory_space<vmem>>, vector<1x1x32xf32>
      %165 = vector.shape_cast %164 : vector<1x1x32xf32> to vector<1x32xf32>
      %166 = arith.addf %162, %165 : vector<1x32xf32>
      %c0_92 = arith.constant 0 : index
      %c0_93 = arith.constant 0 : index
      %167 = vector.load %arg22[%c0_92, %c0_93] : memref<8x32xf32, #tpu.memory_space<vmem>>, vector<1x32xf32>
      tpu.vector_store %arg22[%c0_92, %c0_93], %166 {strides = array<i32>} : memref<8x32xf32, #tpu.memory_space<vmem>>, vector<1x32xf32>,
      %c1 = arith.constant 1 : index
      %168 = memref.load %arg1[%c1] : memref<8xi32, #tpu.memory_space<smem>>
      %c1_94 = arith.constant 1 : index
      %169 = memref.load %arg2[%c1_94] : memref<8xi32, #tpu.memory_space<smem>>
      %170 = arith.index_cast %168 : i32 to index
      %c0_95 = arith.constant 0 : index
      %c0_96 = arith.constant 0 : index
      %171 = vector.load %arg4[%170, %c0_95, %c0_96] : memref<100x1x32xf32, #tpu.memory_space<vmem>>, vector<1x1x32xf32>
      %172 = vector.shape_cast %171 : vector<1x1x32xf32> to vector<1x32xf32>
      %c1_97 = arith.constant 1 : index
      %c0_98 = arith.constant 0 : index
      %c0_99 = arith.constant 0 : index
      %173 = vector.load %arg5[%c1_97, %c0_98, %c0_99] : memref<64x1x32xf32, #tpu.memory_space<vmem>>, vector<1x1x32xf32>
      %174 = vector.shape_cast %173 : vector<1x1x32xf32> to vector<1x32xf32>
      %175 = arith.addf %172, %174 : vector<1x32xf32>
      %176 = arith.index_cast %169 : i32 to index
      %c0_100 = arith.constant 0 : index
      %c0_101 = arith.constant 0 : index
      %177 = vector.load %arg6[%176, %c0_100, %c0_101] : memref<2x1x32xf32, #tpu.memory_space<vmem>>, vector<1x1x32xf32>
      %178 = vector.shape_cast %177 : vector<1x1x32xf32> to vector<1x32xf32>
      %179 = arith.addf %175, %178 : vector<1x32xf32>
      %c1_102 = arith.constant 1 : index
      %c0_103 = arith.constant 0 : index
      %180 = vector.load %arg22[%c1_102, %c0_103] : memref<8x32xf32, #tpu.memory_space<vmem>>, vector<1x32xf32>
      tpu.vector_store %arg22[%c1_102, %c0_103], %179 {strides = array<i32>} : memref<8x32xf32, #tpu.memory_space<vmem>>, vector<1x32xf32>,
      %c2 = arith.constant 2 : index
      %181 = memref.load %arg1[%c2] : memref<8xi32, #tpu.memory_space<smem>>
      %c2_104 = arith.constant 2 : index
      %182 = memref.load %arg2[%c2_104] : memref<8xi32, #tpu.memory_space<smem>>
      %183 = arith.index_cast %181 : i32 to index
      %c0_105 = arith.constant 0 : index
      %c0_106 = arith.constant 0 : index
      %184 = vector.load %arg4[%183, %c0_105, %c0_106] : memref<100x1x32xf32, #tpu.memory_space<vmem>>, vector<1x1x32xf32>
      %185 = vector.shape_cast %184 : vector<1x1x32xf32> to vector<1x32xf32>
      %c2_107 = arith.constant 2 : index
      %c0_108 = arith.constant 0 : index
      %c0_109 = arith.constant 0 : index
      %186 = vector.load %arg5[%c2_107, %c0_108, %c0_109] : memref<64x1x32xf32, #tpu.memory_space<vmem>>, vector<1x1x32xf32>
      %187 = vector.shape_cast %186 : vector<1x1x32xf32> to vector<1x32xf32>
      %188 = arith.addf %185, %187 : vector<1x32xf32>
      %189 = arith.index_cast %182 : i32 to index
      %c0_110 = arith.constant 0 : index
      %c0_111 = arith.constant 0 : index
      %190 = vector.load %arg6[%189, %c0_110, %c0_111] : memref<2x1x32xf32, #tpu.memory_space<vmem>>, vector<1x1x32xf32>
      %191 = vector.shape_cast %190 : vector<1x1x32xf32> to vector<1x32xf32>
      %192 = arith.addf %188, %191 : vector<1x32xf32>
      %c2_112 = arith.constant 2 : index
      %c0_113 = arith.constant 0 : index
      %193 = vector.load %arg22[%c2_112, %c0_113] : memref<8x32xf32, #tpu.memory_space<vmem>>, vector<1x32xf32>
      tpu.vector_store %arg22[%c2_112, %c0_113], %192 {strides = array<i32>} : memref<8x32xf32, #tpu.memory_space<vmem>>, vector<1x32xf32>,
      %c3 = arith.constant 3 : index
      %194 = memref.load %arg1[%c3] : memref<8xi32, #tpu.memory_space<smem>>
      %c3_114 = arith.constant 3 : index
      %195 = memref.load %arg2[%c3_114] : memref<8xi32, #tpu.memory_space<smem>>
      %196 = arith.index_cast %194 : i32 to index
      %c0_115 = arith.constant 0 : index
      %c0_116 = arith.constant 0 : index
      %197 = vector.load %arg4[%196, %c0_115, %c0_116] : memref<100x1x32xf32, #tpu.memory_space<vmem>>, vector<1x1x32xf32>
      %198 = vector.shape_cast %197 : vector<1x1x32xf32> to vector<1x32xf32>
      %c3_117 = arith.constant 3 : index
      %c0_118 = arith.constant 0 : index
      %c0_119 = arith.constant 0 : index
      %199 = vector.load %arg5[%c3_117, %c0_118, %c0_119] : memref<64x1x32xf32, #tpu.memory_space<vmem>>, vector<1x1x32xf32>
      %200 = vector.shape_cast %199 : vector<1x1x32xf32> to vector<1x32xf32>
      %201 = arith.addf %198, %200 : vector<1x32xf32>
      %202 = arith.index_cast %195 : i32 to index
      %c0_120 = arith.constant 0 : index
      %c0_121 = arith.constant 0 : index
      %203 = vector.load %arg6[%202, %c0_120, %c0_121] : memref<2x1x32xf32, #tpu.memory_space<vmem>>, vector<1x1x32xf32>
      %204 = vector.shape_cast %203 : vector<1x1x32xf32> to vector<1x32xf32>
      %205 = arith.addf %201, %204 : vector<1x32xf32>
      %c3_122 = arith.constant 3 : index
      %c0_123 = arith.constant 0 : index
      %206 = vector.load %arg22[%c3_122, %c0_123] : memref<8x32xf32, #tpu.memory_space<vmem>>, vector<1x32xf32>
      tpu.vector_store %arg22[%c3_122, %c0_123], %205 {strides = array<i32>} : memref<8x32xf32, #tpu.memory_space<vmem>>, vector<1x32xf32>,
      %c4 = arith.constant 4 : index
      %207 = memref.load %arg1[%c4] : memref<8xi32, #tpu.memory_space<smem>>
      %c4_124 = arith.constant 4 : index
      %208 = memref.load %arg2[%c4_124] : memref<8xi32, #tpu.memory_space<smem>>
      %209 = arith.index_cast %207 : i32 to index
      %c0_125 = arith.constant 0 : index
      %c0_126 = arith.constant 0 : index
      %210 = vector.load %arg4[%209, %c0_125, %c0_126] : memref<100x1x32xf32, #tpu.memory_space<vmem>>, vector<1x1x32xf32>
      %211 = vector.shape_cast %210 : vector<1x1x32xf32> to vector<1x32xf32>
      %c4_127 = arith.constant 4 : index
      %c0_128 = arith.constant 0 : index
      %c0_129 = arith.constant 0 : index
      %212 = vector.load %arg5[%c4_127, %c0_128, %c0_129] : memref<64x1x32xf32, #tpu.memory_space<vmem>>, vector<1x1x32xf32>
      %213 = vector.shape_cast %212 : vector<1x1x32xf32> to vector<1x32xf32>
      %214 = arith.addf %211, %213 : vector<1x32xf32>
      %215 = arith.index_cast %208 : i32 to index
      %c0_130 = arith.constant 0 : index
      %c0_131 = arith.constant 0 : index
      %216 = vector.load %arg6[%215, %c0_130, %c0_131] : memref<2x1x32xf32, #tpu.memory_space<vmem>>, vector<1x1x32xf32>
      %217 = vector.shape_cast %216 : vector<1x1x32xf32> to vector<1x32xf32>
      %218 = arith.addf %214, %217 : vector<1x32xf32>
      %c4_132 = arith.constant 4 : index
      %c0_133 = arith.constant 0 : index
      %219 = vector.load %arg22[%c4_132, %c0_133] : memref<8x32xf32, #tpu.memory_space<vmem>>, vector<1x32xf32>
      tpu.vector_store %arg22[%c4_132, %c0_133], %218 {strides = array<i32>} : memref<8x32xf32, #tpu.memory_space<vmem>>, vector<1x32xf32>,
      %c5 = arith.constant 5 : index
      %220 = memref.load %arg1[%c5] : memref<8xi32, #tpu.memory_space<smem>>
      %c5_134 = arith.constant 5 : index
      %221 = memref.load %arg2[%c5_134] : memref<8xi32, #tpu.memory_space<smem>>
      %222 = arith.index_cast %220 : i32 to index
      %c0_135 = arith.constant 0 : index
      %c0_136 = arith.constant 0 : index
      %223 = vector.load %arg4[%222, %c0_135, %c0_136] : memref<100x1x32xf32, #tpu.memory_space<vmem>>, vector<1x1x32xf32>
      %224 = vector.shape_cast %223 : vector<1x1x32xf32> to vector<1x32xf32>
      %c5_137 = arith.constant 5 : index
      %c0_138 = arith.constant 0 : index
      %c0_139 = arith.constant 0 : index
      %225 = vector.load %arg5[%c5_137, %c0_138, %c0_139] : memref<64x1x32xf32, #tpu.memory_space<vmem>>, vector<1x1x32xf32>
      %226 = vector.shape_cast %225 : vector<1x1x32xf32> to vector<1x32xf32>
      %227 = arith.addf %224, %226 : vector<1x32xf32>
      %228 = arith.index_cast %221 : i32 to index
      %c0_140 = arith.constant 0 : index
      %c0_141 = arith.constant 0 : index
      %229 = vector.load %arg6[%228, %c0_140, %c0_141] : memref<2x1x32xf32, #tpu.memory_space<vmem>>, vector<1x1x32xf32>
      %230 = vector.shape_cast %229 : vector<1x1x32xf32> to vector<1x32xf32>
      %231 = arith.addf %227, %230 : vector<1x32xf32>
      %c5_142 = arith.constant 5 : index
      %c0_143 = arith.constant 0 : index
      %232 = vector.load %arg22[%c5_142, %c0_143] : memref<8x32xf32, #tpu.memory_space<vmem>>, vector<1x32xf32>
      tpu.vector_store %arg22[%c5_142, %c0_143], %231 {strides = array<i32>} : memref<8x32xf32, #tpu.memory_space<vmem>>, vector<1x32xf32>,
      %c6 = arith.constant 6 : index
      %233 = memref.load %arg1[%c6] : memref<8xi32, #tpu.memory_space<smem>>
      %c6_144 = arith.constant 6 : index
      %234 = memref.load %arg2[%c6_144] : memref<8xi32, #tpu.memory_space<smem>>
      %235 = arith.index_cast %233 : i32 to index
      %c0_145 = arith.constant 0 : index
      %c0_146 = arith.constant 0 : index
      %236 = vector.load %arg4[%235, %c0_145, %c0_146] : memref<100x1x32xf32, #tpu.memory_space<vmem>>, vector<1x1x32xf32>
      %237 = vector.shape_cast %236 : vector<1x1x32xf32> to vector<1x32xf32>
      %c6_147 = arith.constant 6 : index
      %c0_148 = arith.constant 0 : index
      %c0_149 = arith.constant 0 : index
      %238 = vector.load %arg5[%c6_147, %c0_148, %c0_149] : memref<64x1x32xf32, #tpu.memory_space<vmem>>, vector<1x1x32xf32>
      %239 = vector.shape_cast %238 : vector<1x1x32xf32> to vector<1x32xf32>
      %240 = arith.addf %237, %239 : vector<1x32xf32>
      %241 = arith.index_cast %234 : i32 to index
      %c0_150 = arith.constant 0 : index
      %c0_151 = arith.constant 0 : index
      %242 = vector.load %arg6[%241, %c0_150, %c0_151] : memref<2x1x32xf32, #tpu.memory_space<vmem>>, vector<1x1x32xf32>
      %243 = vector.shape_cast %242 : vector<1x1x32xf32> to vector<1x32xf32>
      %244 = arith.addf %240, %243 : vector<1x32xf32>
      %c6_152 = arith.constant 6 : index
      %c0_153 = arith.constant 0 : index
      %245 = vector.load %arg22[%c6_152, %c0_153] : memref<8x32xf32, #tpu.memory_space<vmem>>, vector<1x32xf32>
      tpu.vector_store %arg22[%c6_152, %c0_153], %244 {strides = array<i32>} : memref<8x32xf32, #tpu.memory_space<vmem>>, vector<1x32xf32>,
      %c7 = arith.constant 7 : index
      %246 = memref.load %arg1[%c7] : memref<8xi32, #tpu.memory_space<smem>>
      %c7_154 = arith.constant 7 : index
      %247 = memref.load %arg2[%c7_154] : memref<8xi32, #tpu.memory_space<smem>>
      %248 = arith.index_cast %246 : i32 to index
      %c0_155 = arith.constant 0 : index
      %c0_156 = arith.constant 0 : index
      %249 = vector.load %arg4[%248, %c0_155, %c0_156] : memref<100x1x32xf32, #tpu.memory_space<vmem>>, vector<1x1x32xf32>
      %250 = vector.shape_cast %249 : vector<1x1x32xf32> to vector<1x32xf32>
      %c7_157 = arith.constant 7 : index
      %c0_158 = arith.constant 0 : index
      %c0_159 = arith.constant 0 : index
      %251 = vector.load %arg5[%c7_157, %c0_158, %c0_159] : memref<64x1x32xf32, #tpu.memory_space<vmem>>, vector<1x1x32xf32>
      %252 = vector.shape_cast %251 : vector<1x1x32xf32> to vector<1x32xf32>
      %253 = arith.addf %250, %252 : vector<1x32xf32>
      %254 = arith.index_cast %247 : i32 to index
      %c0_160 = arith.constant 0 : index
      %c0_161 = arith.constant 0 : index
      %255 = vector.load %arg6[%254, %c0_160, %c0_161] : memref<2x1x32xf32, #tpu.memory_space<vmem>>, vector<1x1x32xf32>
      %256 = vector.shape_cast %255 : vector<1x1x32xf32> to vector<1x32xf32>
      %257 = arith.addf %253, %256 : vector<1x32xf32>
      %c7_162 = arith.constant 7 : index
      %c0_163 = arith.constant 0 : index
      %258 = vector.load %arg22[%c7_162, %c0_163] : memref<8x32xf32, #tpu.memory_space<vmem>>, vector<1x32xf32>
      tpu.vector_store %arg22[%c7_162, %c0_163], %257 {strides = array<i32>} : memref<8x32xf32, #tpu.memory_space<vmem>>, vector<1x32xf32>,
      %c0_164 = arith.constant 0 : index
      %c0_165 = arith.constant 0 : index
      %259 = vector.load %arg22[%c0_164, %c0_165] : memref<8x32xf32, #tpu.memory_space<vmem>>, vector<8x32xf32>
      %c0_166 = arith.constant 0 : index
      %c0_167 = arith.constant 0 : index
      %260 = vector.load %arg7[%c0_166, %c0_167] : memref<1x32xf32, #tpu.memory_space<vmem>>, vector<1x32xf32>
      %c0_168 = arith.constant 0 : index
      %c0_169 = arith.constant 0 : index
      %261 = vector.load %arg8[%c0_168, %c0_169] : memref<1x32xf32, #tpu.memory_space<vmem>>, vector<1x32xf32>
      %cst_170 = arith.constant dense<0.000000e+00> : vector<8xf32>
      %262 = vector.multi_reduction <add>, %259, %cst_170 [1] : vector<8x32xf32> to vector<8xf32>
      %263 = vector.shape_cast %262 : vector<8xf32> to vector<8x1xf32>
      %cst_171 = arith.constant 3.200000e+01 : f32
      %264 = vector.broadcast %cst_171 : f32 to vector<8x1xf32>
      %265 = arith.divf %263, %264 : vector<8x1xf32>
      %266 = vector.broadcast %265 : vector<8x1xf32> to vector<8x32xf32>
      %267 = arith.subf %259, %266 : vector<8x32xf32>
      %268 = arith.mulf %267, %267 : vector<8x32xf32>
      %cst_172 = arith.constant dense<0.000000e+00> : vector<8xf32>
      %269 = vector.multi_reduction <add>, %268, %cst_172 [1] : vector<8x32xf32> to vector<8xf32>
      %270 = vector.shape_cast %269 : vector<8xf32> to vector<8x1xf32>
      %cst_173 = arith.constant 3.200000e+01 : f32
      %271 = vector.broadcast %cst_173 : f32 to vector<8x1xf32>
      %272 = arith.divf %270, %271 : vector<8x1xf32>
      %273 = vector.broadcast %265 : vector<8x1xf32> to vector<8x32xf32>
      %274 = arith.subf %259, %273 : vector<8x32xf32>
      %cst_174 = arith.constant 9.99999996E-13 : f32
      %275 = vector.broadcast %cst_174 : f32 to vector<8x1xf32>
      %276 = arith.addf %272, %275 : vector<8x1xf32>
      %277 = math.rsqrt %276 : vector<8x1xf32>
      %278 = vector.broadcast %277 : vector<8x1xf32> to vector<8x32xf32>
      %279 = arith.mulf %274, %278 : vector<8x32xf32>
      %280 = vector.broadcast %260 : vector<1x32xf32> to vector<8x32xf32>
      %281 = arith.mulf %279, %280 : vector<8x32xf32>
      %282 = vector.broadcast %261 : vector<1x32xf32> to vector<8x32xf32>
      %283 = arith.addf %281, %282 : vector<8x32xf32>
      %c0_175 = arith.constant 0 : index
      %c0_176 = arith.constant 0 : index
      %284 = vector.load %arg22[%c0_175, %c0_176] : memref<8x32xf32, #tpu.memory_space<vmem>>, vector<8x32xf32>
      tpu.vector_store %arg22[%c0_175, %c0_176], %283 {strides = array<i32>} : memref<8x32xf32, #tpu.memory_space<vmem>>, vector<8x32xf32>,
      %285 = tpu.iota {dimensions = array<i32: 2>} : vector<1x1x8xi32>
      %cst_177 = arith.constant 0.000000e+00 : f32
      %286 = vector.broadcast %cst_177 : f32 to vector<1x1x8xf32>
      %c0_178 = arith.constant 0 : index
      %287 = memref.load %arg3[%c0_178] : memref<8xi32, #tpu.memory_space<smem>>
      %c1_i32 = arith.constant 1 : i32
      %288 = arith.subi %c1_i32, %287 : i32
      %289 = arith.sitofp %288 : i32 to f32
      %cst_179 = arith.constant -1.000000e+09 : f32
      %290 = arith.mulf %289, %cst_179 : f32
      %c0_i32_180 = arith.constant 0 : i32
      %291 = vector.broadcast %c0_i32_180 : i32 to vector<1x1x8xi32>
      %292 = arith.cmpi eq, %285, %291 : vector<1x1x8xi32>
      %293 = vector.broadcast %290 : f32 to vector<1x1x8xf32>
      %294 = arith.select %292, %293, %286 : vector<1x1x8xi1>, vector<1x1x8xf32>
      %c1_181 = arith.constant 1 : index
      %295 = memref.load %arg3[%c1_181] : memref<8xi32, #tpu.memory_space<smem>>
      %c1_i32_182 = arith.constant 1 : i32
      %296 = arith.subi %c1_i32_182, %295 : i32
      %297 = arith.sitofp %296 : i32 to f32
      %cst_183 = arith.constant -1.000000e+09 : f32
      %298 = arith.mulf %297, %cst_183 : f32
      %c1_i32_184 = arith.constant 1 : i32
      %299 = vector.broadcast %c1_i32_184 : i32 to vector<1x1x8xi32>
      %300 = arith.cmpi eq, %285, %299 : vector<1x1x8xi32>
      %301 = vector.broadcast %298 : f32 to vector<1x1x8xf32>
      %302 = arith.select %300, %301, %294 : vector<1x1x8xi1>, vector<1x1x8xf32>
      %c2_185 = arith.constant 2 : index
      %303 = memref.load %arg3[%c2_185] : memref<8xi32, #tpu.memory_space<smem>>
      %c1_i32_186 = arith.constant 1 : i32
      %304 = arith.subi %c1_i32_186, %303 : i32
      %305 = arith.sitofp %304 : i32 to f32
      %cst_187 = arith.constant -1.000000e+09 : f32
      %306 = arith.mulf %305, %cst_187 : f32
      %c2_i32 = arith.constant 2 : i32
      %307 = vector.broadcast %c2_i32 : i32 to vector<1x1x8xi32>
      %308 = arith.cmpi eq, %285, %307 : vector<1x1x8xi32>
      %309 = vector.broadcast %306 : f32 to vector<1x1x8xf32>
      %310 = arith.select %308, %309, %302 : vector<1x1x8xi1>, vector<1x1x8xf32>
      %c3_188 = arith.constant 3 : index
      %311 = memref.load %arg3[%c3_188] : memref<8xi32, #tpu.memory_space<smem>>
      %c1_i32_189 = arith.constant 1 : i32
      %312 = arith.subi %c1_i32_189, %311 : i32
      %313 = arith.sitofp %312 : i32 to f32
      %cst_190 = arith.constant -1.000000e+09 : f32
      %314 = arith.mulf %313, %cst_190 : f32
      %c3_i32 = arith.constant 3 : i32
      %315 = vector.broadcast %c3_i32 : i32 to vector<1x1x8xi32>
      %316 = arith.cmpi eq, %285, %315 : vector<1x1x8xi32>
      %317 = vector.broadcast %314 : f32 to vector<1x1x8xf32>
      %318 = arith.select %316, %317, %310 : vector<1x1x8xi1>, vector<1x1x8xf32>
      %c4_191 = arith.constant 4 : index
      %319 = memref.load %arg3[%c4_191] : memref<8xi32, #tpu.memory_space<smem>>
      %c1_i32_192 = arith.constant 1 : i32
      %320 = arith.subi %c1_i32_192, %319 : i32
      %321 = arith.sitofp %320 : i32 to f32
      %cst_193 = arith.constant -1.000000e+09 : f32
      %322 = arith.mulf %321, %cst_193 : f32
      %c4_i32 = arith.constant 4 : i32
      %323 = vector.broadcast %c4_i32 : i32 to vector<1x1x8xi32>
      %324 = arith.cmpi eq, %285, %323 : vector<1x1x8xi32>
      %325 = vector.broadcast %322 : f32 to vector<1x1x8xf32>
      %326 = arith.select %324, %325, %318 : vector<1x1x8xi1>, vector<1x1x8xf32>
      %c5_194 = arith.constant 5 : index
      %327 = memref.load %arg3[%c5_194] : memref<8xi32, #tpu.memory_space<smem>>
      %c1_i32_195 = arith.constant 1 : i32
      %328 = arith.subi %c1_i32_195, %327 : i32
      %329 = arith.sitofp %328 : i32 to f32
      %cst_196 = arith.constant -1.000000e+09 : f32
      %330 = arith.mulf %329, %cst_196 : f32
      %c5_i32 = arith.constant 5 : i32
      %331 = vector.broadcast %c5_i32 : i32 to vector<1x1x8xi32>
      %332 = arith.cmpi eq, %285, %331 : vector<1x1x8xi32>
      %333 = vector.broadcast %330 : f32 to vector<1x1x8xf32>
      %334 = arith.select %332, %333, %326 : vector<1x1x8xi1>, vector<1x1x8xf32>
      %c6_197 = arith.constant 6 : index
      %335 = memref.load %arg3[%c6_197] : memref<8xi32, #tpu.memory_space<smem>>
      %c1_i32_198 = arith.constant 1 : i32
      %336 = arith.subi %c1_i32_198, %335 : i32
      %337 = arith.sitofp %336 : i32 to f32
      %cst_199 = arith.constant -1.000000e+09 : f32
      %338 = arith.mulf %337, %cst_199 : f32
      %c6_i32 = arith.constant 6 : i32
      %339 = vector.broadcast %c6_i32 : i32 to vector<1x1x8xi32>
      %340 = arith.cmpi eq, %285, %339 : vector<1x1x8xi32>
      %341 = vector.broadcast %338 : f32 to vector<1x1x8xf32>
      %342 = arith.select %340, %341, %334 : vector<1x1x8xi1>, vector<1x1x8xf32>
      %c7_200 = arith.constant 7 : index
      %343 = memref.load %arg3[%c7_200] : memref<8xi32, #tpu.memory_space<smem>>
      %c1_i32_201 = arith.constant 1 : i32
      %344 = arith.subi %c1_i32_201, %343 : i32
      %345 = arith.sitofp %344 : i32 to f32
      %cst_202 = arith.constant -1.000000e+09 : f32
      %346 = arith.mulf %345, %cst_202 : f32
      %c7_i32 = arith.constant 7 : i32
      %347 = vector.broadcast %c7_i32 : i32 to vector<1x1x8xi32>
      %348 = arith.cmpi eq, %285, %347 : vector<1x1x8xi32>
      %349 = vector.broadcast %346 : f32 to vector<1x1x8xf32>
      %350 = arith.select %348, %349, %342 : vector<1x1x8xi1>, vector<1x1x8xf32>
      %c0_203 = arith.constant 0 : index
      %c0_204 = arith.constant 0 : index
      %c0_205 = arith.constant 0 : index
      %351 = vector.load %arg23[%c0_203, %c0_204, %c0_205] : memref<1x1x8xf32, #tpu.memory_space<vmem>>, vector<1x1x8xf32>
      tpu.vector_store %arg23[%c0_203, %c0_204, %c0_205], %350 {strides = array<i32>} : memref<1x1x8xf32, #tpu.memory_space<vmem>>, vector<1x1x8xf32>,
    } else {
    }
    %c0 = arith.constant 0 : index
    %c0_1 = arith.constant 0 : index
    %3 = vector.load %arg22[%c0, %c0_1] : memref<8x32xf32, #tpu.memory_space<vmem>>, vector<8x32xf32>
    %4 = vector.shape_cast %3 : vector<8x32xf32> to vector<1x8x32xf32>
    %5 = vector.shape_cast %4 : vector<1x8x32xf32> to vector<1x8x32xf32>
    %6 = vector.broadcast %5 : vector<1x8x32xf32> to vector<12x8x32xf32>
    %c0_2 = arith.constant 0 : index
    %c0_3 = arith.constant 0 : index
    %c0_4 = arith.constant 0 : index
    %c0_5 = arith.constant 0 : index
    %7 = vector.load %arg9[%c0_2, %c0_3, %c0_4, %c0_5] : memref<1x12x32x8xf32, #tpu.memory_space<vmem>>, vector<1x12x32x8xf32>
    %8 = vector.shape_cast %7 : vector<1x12x32x8xf32> to vector<12x32x8xf32>
    %cst = arith.constant dense<0.000000e+00> : vector<12x8x8xf32>
    %9 = tpu.matmul %6, %8, %cst {dimension_numbers = #tpu.dot_dimension_numbers<[2], [1], [1], [2], [0, 0, 0, 1, 1, 2], [0], [0]>} : vector<12x8x32xf32>, vector<12x32x8xf32>, vector<12x8x8xf32> -> vector<12x8x8xf32>
    %c0_6 = arith.constant 0 : index
    %c0_7 = arith.constant 0 : index
    %c0_8 = arith.constant 0 : index
    %c0_9 = arith.constant 0 : index
    %10 = vector.load %arg10[%c0_6, %c0_7, %c0_8, %c0_9] : memref<1x12x1x8xf32, #tpu.memory_space<vmem>>, vector<1x12x1x8xf32>
    %11 = vector.shape_cast %10 : vector<1x12x1x8xf32> to vector<12x1x8xf32>
    %12 = vector.broadcast %11 : vector<12x1x8xf32> to vector<12x8x8xf32>
    %13 = arith.addf %9, %12 : vector<12x8x8xf32>
    %14 = vector.extract_strided_slice %13 {offsets = [0, 0, 0], sizes = [4, 8, 8], strides = [1, 1, 1]} : vector<12x8x8xf32> to vector<4x8x8xf32>
    %15 = vector.extract_strided_slice %13 {offsets = [4, 0, 0], sizes = [4, 8, 8], strides = [1, 1, 1]} : vector<12x8x8xf32> to vector<4x8x8xf32>
    %16 = vector.extract_strided_slice %13 {offsets = [8, 0, 0], sizes = [4, 8, 8], strides = [1, 1, 1]} : vector<12x8x8xf32> to vector<4x8x8xf32>
    %cst_10 = arith.constant dense<0.000000e+00> : vector<4x8x8xf32>
    %17 = tpu.matmul %14, %15, %cst_10 {dimension_numbers = #tpu.dot_dimension_numbers<[2], [2], [1], [1], [0, 0, 0, 1, 1, 1], [0], [0]>} : vector<4x8x8xf32>, vector<4x8x8xf32>, vector<4x8x8xf32> -> vector<4x8x8xf32>
    %cst_11 = arith.constant 0.353553385 : f32
    %18 = vector.broadcast %cst_11 : f32 to vector<4x8x8xf32>
    %19 = arith.mulf %17, %18 : vector<4x8x8xf32>
    %c0_12 = arith.constant 0 : index
    %c0_13 = arith.constant 0 : index
    %c0_14 = arith.constant 0 : index
    %20 = vector.load %arg23[%c0_12, %c0_13, %c0_14] : memref<1x1x8xf32, #tpu.memory_space<vmem>>, vector<1x1x8xf32>
    %21 = vector.broadcast %20 : vector<1x1x8xf32> to vector<4x8x8xf32>
    %22 = arith.addf %19, %21 : vector<4x8x8xf32>
    %cst_15 = arith.constant dense<0xFF800000> : vector<4x8xf32>
    %23 = vector.multi_reduction <maximumf>, %22, %cst_15 [2] : vector<4x8x8xf32> to vector<4x8xf32>
    %24 = vector.shape_cast %23 : vector<4x8xf32> to vector<4x8x1xf32>
    %25 = vector.broadcast %24 : vector<4x8x1xf32> to vector<4x8x8xf32>
    %26 = arith.subf %22, %25 : vector<4x8x8xf32>
    %27 = math.exp %26 : vector<4x8x8xf32>
    %cst_16 = arith.constant dense<0.000000e+00> : vector<4x8xf32>
    %28 = vector.multi_reduction <add>, %27, %cst_16 [2] : vector<4x8x8xf32> to vector<4x8xf32>
    %29 = vector.shape_cast %28 : vector<4x8xf32> to vector<4x8x1xf32>
    %30 = tpu.reciprocal %29 {approx = true} : vector<4x8x1xf32> -> vector<4x8x1xf32>
    %31 = vector.broadcast %30 : vector<4x8x1xf32> to vector<4x8x8xf32>
    %32 = arith.mulf %27, %31 : vector<4x8x8xf32>
    %cst_17 = arith.constant dense<0.000000e+00> : vector<4x8x8xf32>
    %33 = tpu.matmul %32, %16, %cst_17 {dimension_numbers = #tpu.dot_dimension_numbers<[2], [1], [1], [2], [0, 0, 0, 1, 1, 2], [0], [0]>} : vector<4x8x8xf32>, vector<4x8x8xf32>, vector<4x8x8xf32> -> vector<4x8x8xf32>
    %c0_18 = arith.constant 0 : index
    %c0_19 = arith.constant 0 : index
    %c0_20 = arith.constant 0 : index
    %c0_21 = arith.constant 0 : index
    %34 = vector.load %arg11[%c0_18, %c0_19, %c0_20, %c0_21] : memref<1x4x8x32xf32, #tpu.memory_space<vmem>>, vector<1x4x8x32xf32>
    %35 = vector.shape_cast %34 : vector<1x4x8x32xf32> to vector<4x8x32xf32>
    %cst_22 = arith.constant dense<0.000000e+00> : vector<4x8x32xf32>
    %36 = tpu.matmul %33, %35, %cst_22 {dimension_numbers = #tpu.dot_dimension_numbers<[2], [1], [1], [2], [0, 0, 0, 1, 1, 2], [0], [0]>} : vector<4x8x8xf32>, vector<4x8x32xf32>, vector<4x8x32xf32> -> vector<4x8x32xf32>
    %cst_23 = arith.constant dense<0.000000e+00> : vector<8x32xf32>
    %37 = vector.multi_reduction <add>, %36, %cst_23 [0] : vector<4x8x32xf32> to vector<8x32xf32>
    %c0_24 = arith.constant 0 : index
    %c0_25 = arith.constant 0 : index
    %c0_26 = arith.constant 0 : index
    %38 = vector.load %arg12[%c0_24, %c0_25, %c0_26] : memref<1x1x32xf32, #tpu.memory_space<vmem>>, vector<1x1x32xf32>
    %39 = vector.shape_cast %38 : vector<1x1x32xf32> to vector<1x32xf32>
    %40 = vector.broadcast %39 : vector<1x32xf32> to vector<8x32xf32>
    %41 = arith.addf %37, %40 : vector<8x32xf32>
    %42 = arith.addf %41, %3 : vector<8x32xf32>
    %c0_27 = arith.constant 0 : index
    %c0_28 = arith.constant 0 : index
    %c0_29 = arith.constant 0 : index
    %43 = vector.load %arg13[%c0_27, %c0_28, %c0_29] : memref<1x1x32xf32, #tpu.memory_space<vmem>>, vector<1x1x32xf32>
    %44 = vector.shape_cast %43 : vector<1x1x32xf32> to vector<1x32xf32>
    %c0_30 = arith.constant 0 : index
    %c0_31 = arith.constant 0 : index
    %c0_32 = arith.constant 0 : index
    %45 = vector.load %arg14[%c0_30, %c0_31, %c0_32] : memref<1x1x32xf32, #tpu.memory_space<vmem>>, vector<1x1x32xf32>
    %46 = vector.shape_cast %45 : vector<1x1x32xf32> to vector<1x32xf32>
    %cst_33 = arith.constant dense<0.000000e+00> : vector<8xf32>
    %47 = vector.multi_reduction <add>, %42, %cst_33 [1] : vector<8x32xf32> to vector<8xf32>
    %48 = vector.shape_cast %47 : vector<8xf32> to vector<8x1xf32>
    %cst_34 = arith.constant 3.200000e+01 : f32
    %49 = vector.broadcast %cst_34 : f32 to vector<8x1xf32>
    %50 = arith.divf %48, %49 : vector<8x1xf32>
    %51 = vector.broadcast %50 : vector<8x1xf32> to vector<8x32xf32>
    %52 = arith.subf %42, %51 : vector<8x32xf32>
    %53 = arith.mulf %52, %52 : vector<8x32xf32>
    %cst_35 = arith.constant dense<0.000000e+00> : vector<8xf32>
    %54 = vector.multi_reduction <add>, %53, %cst_35 [1] : vector<8x32xf32> to vector<8xf32>
    %55 = vector.shape_cast %54 : vector<8xf32> to vector<8x1xf32>
    %cst_36 = arith.constant 3.200000e+01 : f32
    %56 = vector.broadcast %cst_36 : f32 to vector<8x1xf32>
    %57 = arith.divf %55, %56 : vector<8x1xf32>
    %58 = vector.broadcast %50 : vector<8x1xf32> to vector<8x32xf32>
    %59 = arith.subf %42, %58 : vector<8x32xf32>
    %cst_37 = arith.constant 9.99999996E-13 : f32
    %60 = vector.broadcast %cst_37 : f32 to vector<8x1xf32>
    %61 = arith.addf %57, %60 : vector<8x1xf32>
    %62 = math.rsqrt %61 : vector<8x1xf32>
    %63 = vector.broadcast %62 : vector<8x1xf32> to vector<8x32xf32>
    %64 = arith.mulf %59, %63 : vector<8x32xf32>
    %65 = vector.broadcast %44 : vector<1x32xf32> to vector<8x32xf32>
    %66 = arith.mulf %64, %65 : vector<8x32xf32>
    %67 = vector.broadcast %46 : vector<1x32xf32> to vector<8x32xf32>
    %68 = arith.addf %66, %67 : vector<8x32xf32>
    %c0_38 = arith.constant 0 : index
    %c0_39 = arith.constant 0 : index
    %c0_40 = arith.constant 0 : index
    %69 = vector.load %arg15[%c0_38, %c0_39, %c0_40] : memref<1x32x64xf32, #tpu.memory_space<vmem>>, vector<1x32x64xf32>
    %70 = vector.shape_cast %69 : vector<1x32x64xf32> to vector<32x64xf32>
    %cst_41 = arith.constant dense<0.000000e+00> : vector<8x64xf32>
    %71 = tpu.matmul %68, %70, %cst_41 {dimension_numbers = #tpu.dot_dimension_numbers<[1], [0], [0], [1], [0, 0, 1, 1], [], []>} : vector<8x32xf32>, vector<32x64xf32>, vector<8x64xf32> -> vector<8x64xf32>
    %c0_42 = arith.constant 0 : index
    %c0_43 = arith.constant 0 : index
    %c0_44 = arith.constant 0 : index
    %72 = vector.load %arg16[%c0_42, %c0_43, %c0_44] : memref<1x1x64xf32, #tpu.memory_space<vmem>>, vector<1x1x64xf32>
    %73 = vector.shape_cast %72 : vector<1x1x64xf32> to vector<1x64xf32>
    %74 = vector.broadcast %73 : vector<1x64xf32> to vector<8x64xf32>
    %75 = arith.addf %71, %74 : vector<8x64xf32>
    %cst_45 = arith.constant 5.000000e-01 : f32
    %76 = vector.broadcast %cst_45 : f32 to vector<8x64xf32>
    %77 = arith.mulf %76, %75 : vector<8x64xf32>
    %cst_46 = arith.constant 0.707106769 : f32
    %78 = vector.broadcast %cst_46 : f32 to vector<8x64xf32>
    %79 = arith.mulf %75, %78 : vector<8x64xf32>
    %cst_47 = arith.constant 0.000000e+00 : f32
    %80 = vector.broadcast %cst_47 : f32 to vector<8x64xf32>
    %81 = arith.cmpf olt, %79, %80 : vector<8x64xf32>
    %cst_48 = arith.constant -1.000000e+00 : f32
    %cst_49 = arith.constant 1.000000e+00 : f32
    %82 = vector.broadcast %cst_48 : f32 to vector<8x64xf32>
    %83 = vector.broadcast %cst_49 : f32 to vector<8x64xf32>
    %84 = arith.select %81, %82, %83 : vector<8x64xi1>, vector<8x64xf32>
    %85 = math.absf %79 : vector<8x64xf32>
    %cst_50 = arith.constant 0.327591091 : f32
    %86 = vector.broadcast %cst_50 : f32 to vector<8x64xf32>
    %87 = arith.mulf %86, %85 : vector<8x64xf32>
    %cst_51 = arith.constant 1.000000e+00 : f32
    %88 = vector.broadcast %cst_51 : f32 to vector<8x64xf32>
    %89 = arith.addf %88, %87 : vector<8x64xf32>
    %cst_52 = arith.constant 1.000000e+00 : f32
    %90 = vector.broadcast %cst_52 : f32 to vector<8x64xf32>
    %91 = arith.divf %90, %89 : vector<8x64xf32>
    %cst_53 = arith.constant 1.06140542 : f32
    %92 = vector.broadcast %cst_53 : f32 to vector<8x64xf32>
    %93 = arith.mulf %92, %91 : vector<8x64xf32>
    %cst_54 = arith.constant -1.45315206 : f32
    %94 = vector.broadcast %cst_54 : f32 to vector<8x64xf32>
    %95 = arith.addf %93, %94 : vector<8x64xf32>
    %96 = arith.mulf %95, %91 : vector<8x64xf32>
    %cst_55 = arith.constant 1.42141378 : f32
    %97 = vector.broadcast %cst_55 : f32 to vector<8x64xf32>
    %98 = arith.addf %96, %97 : vector<8x64xf32>
    %99 = arith.mulf %98, %91 : vector<8x64xf32>
    %cst_56 = arith.constant -0.284496725 : f32
    %100 = vector.broadcast %cst_56 : f32 to vector<8x64xf32>
    %101 = arith.addf %99, %100 : vector<8x64xf32>
    %102 = arith.mulf %101, %91 : vector<8x64xf32>
    %cst_57 = arith.constant 0.254829586 : f32
    %103 = vector.broadcast %cst_57 : f32 to vector<8x64xf32>
    %104 = arith.addf %102, %103 : vector<8x64xf32>
    %105 = arith.mulf %104, %91 : vector<8x64xf32>
    %cst_58 = arith.constant 0.000000e+00 : f32
    %106 = vector.broadcast %cst_58 : f32 to vector<8x64xf32>
    %107 = arith.subf %106, %85 : vector<8x64xf32>
    %108 = arith.mulf %107, %85 : vector<8x64xf32>
    %109 = math.exp %108 : vector<8x64xf32>
    %110 = arith.mulf %105, %109 : vector<8x64xf32>
    %cst_59 = arith.constant 1.000000e+00 : f32
    %111 = vector.broadcast %cst_59 : f32 to vector<8x64xf32>
    %112 = arith.subf %111, %110 : vector<8x64xf32>
    %113 = arith.mulf %84, %112 : vector<8x64xf32>
    %cst_60 = arith.constant 1.000000e+00 : f32
    %114 = vector.broadcast %cst_60 : f32 to vector<8x64xf32>
    %115 = arith.addf %114, %113 : vector<8x64xf32>
    %116 = arith.mulf %77, %115 : vector<8x64xf32>
    %c0_61 = arith.constant 0 : index
    %c0_62 = arith.constant 0 : index
    %c0_63 = arith.constant 0 : index
    %117 = vector.load %arg17[%c0_61, %c0_62, %c0_63] : memref<1x64x32xf32, #tpu.memory_space<vmem>>, vector<1x64x32xf32>
    %118 = vector.shape_cast %117 : vector<1x64x32xf32> to vector<64x32xf32>
    %cst_64 = arith.constant dense<0.000000e+00> : vector<8x32xf32>
    %119 = tpu.matmul %116, %118, %cst_64 {dimension_numbers = #tpu.dot_dimension_numbers<[1], [0], [0], [1], [0, 0, 1, 1], [], []>} : vector<8x64xf32>, vector<64x32xf32>, vector<8x32xf32> -> vector<8x32xf32>
    %c0_65 = arith.constant 0 : index
    %c0_66 = arith.constant 0 : index
    %c0_67 = arith.constant 0 : index
    %120 = vector.load %arg18[%c0_65, %c0_66, %c0_67] : memref<1x1x32xf32, #tpu.memory_space<vmem>>, vector<1x1x32xf32>
    %121 = vector.shape_cast %120 : vector<1x1x32xf32> to vector<1x32xf32>
    %122 = vector.broadcast %121 : vector<1x32xf32> to vector<8x32xf32>
    %123 = arith.addf %119, %122 : vector<8x32xf32>
    %124 = arith.addf %123, %68 : vector<8x32xf32>
    %c0_68 = arith.constant 0 : index
    %c0_69 = arith.constant 0 : index
    %c0_70 = arith.constant 0 : index
    %125 = vector.load %arg19[%c0_68, %c0_69, %c0_70] : memref<1x1x32xf32, #tpu.memory_space<vmem>>, vector<1x1x32xf32>
    %126 = vector.shape_cast %125 : vector<1x1x32xf32> to vector<1x32xf32>
    %c0_71 = arith.constant 0 : index
    %c0_72 = arith.constant 0 : index
    %c0_73 = arith.constant 0 : index
    %127 = vector.load %arg20[%c0_71, %c0_72, %c0_73] : memref<1x1x32xf32, #tpu.memory_space<vmem>>, vector<1x1x32xf32>
    %128 = vector.shape_cast %127 : vector<1x1x32xf32> to vector<1x32xf32>
    %cst_74 = arith.constant dense<0.000000e+00> : vector<8xf32>
    %129 = vector.multi_reduction <add>, %124, %cst_74 [1] : vector<8x32xf32> to vector<8xf32>
    %130 = vector.shape_cast %129 : vector<8xf32> to vector<8x1xf32>
    %cst_75 = arith.constant 3.200000e+01 : f32
    %131 = vector.broadcast %cst_75 : f32 to vector<8x1xf32>
    %132 = arith.divf %130, %131 : vector<8x1xf32>
    %133 = vector.broadcast %132 : vector<8x1xf32> to vector<8x32xf32>
    %134 = arith.subf %124, %133 : vector<8x32xf32>
    %135 = arith.mulf %134, %134 : vector<8x32xf32>
    %cst_76 = arith.constant dense<0.000000e+00> : vector<8xf32>
    %136 = vector.multi_reduction <add>, %135, %cst_76 [1] : vector<8x32xf32> to vector<8xf32>
    %137 = vector.shape_cast %136 : vector<8xf32> to vector<8x1xf32>
    %cst_77 = arith.constant 3.200000e+01 : f32
    %138 = vector.broadcast %cst_77 : f32 to vector<8x1xf32>
    %139 = arith.divf %137, %138 : vector<8x1xf32>
    %140 = vector.broadcast %132 : vector<8x1xf32> to vector<8x32xf32>
    %141 = arith.subf %124, %140 : vector<8x32xf32>
    %cst_78 = arith.constant 9.99999996E-13 : f32
    %142 = vector.broadcast %cst_78 : f32 to vector<8x1xf32>
    %143 = arith.addf %139, %142 : vector<8x1xf32>
    %144 = math.rsqrt %143 : vector<8x1xf32>
    %145 = vector.broadcast %144 : vector<8x1xf32> to vector<8x32xf32>
    %146 = arith.mulf %141, %145 : vector<8x32xf32>
    %147 = vector.broadcast %126 : vector<1x32xf32> to vector<8x32xf32>
    %148 = arith.mulf %146, %147 : vector<8x32xf32>
    %149 = vector.broadcast %128 : vector<1x32xf32> to vector<8x32xf32>
    %150 = arith.addf %148, %149 : vector<8x32xf32>
    %c0_79 = arith.constant 0 : index
    %c0_80 = arith.constant 0 : index
    %151 = vector.load %arg22[%c0_79, %c0_80] : memref<8x32xf32, #tpu.memory_space<vmem>>, vector<8x32xf32>
    tpu.vector_store %arg22[%c0_79, %c0_80], %150 {strides = array<i32>} : memref<8x32xf32, #tpu.memory_space<vmem>>, vector<8x32xf32>,
    %c0_i32_81 = arith.constant 0 : i32
    %152 = arith.cmpi eq, %arg0, %c0_i32_81 : i32
    %153 = arith.extui %152 : i1 to i32
    %c0_i32_82 = arith.constant 0 : i32
    %154 = arith.cmpi ne, %153, %c0_i32_82 : i32
    scf.if %154 {
      %c1 = arith.constant 1 : index
      %c0_83 = arith.constant 0 : index
      %155 = vector.load %arg22[%c1, %c0_83] : memref<8x32xf32, #tpu.memory_space<vmem>>, vector<6x32xf32>
      %c0_84 = arith.constant 0 : index
      %c0_85 = arith.constant 0 : index
      %156 = vector.load %arg21[%c0_84, %c0_85] : memref<6x32xf32, #tpu.memory_space<vmem>>, vector<6x32xf32>
      tpu.vector_store %arg21[%c0_84, %c0_85], %155 {strides = array<i32>} : memref<6x32xf32, #tpu.memory_space<vmem>>, vector<6x32xf32>,
    } else {
    }
    return
  }
  func.func @transform_0(%arg0: i32, %arg1: memref<8xi32, #tpu.memory_space<smem>>, %arg2: memref<8xi32, #tpu.memory_space<smem>>, %arg3: memref<8xi32, #tpu.memory_space<smem>>) -> (i32, i32, i32) {
    %c0_i32 = arith.constant 0 : i32
    %c0_i32_0 = arith.constant 0 : i32
    %c0_i32_1 = arith.constant 0 : i32
    %c0_i32_2 = arith.constant 0 : i32
    return %c0_i32, %c0_i32_0, %c0_i32_1 : i32, i32, i32
  }
  func.func @transform_1(%arg0: i32, %arg1: memref<8xi32, #tpu.memory_space<smem>>, %arg2: memref<8xi32, #tpu.memory_space<smem>>, %arg3: memref<8xi32, #tpu.memory_space<smem>>) -> (i32, i32, i32) {
    %c0_i32 = arith.constant 0 : i32
    %c0_i32_0 = arith.constant 0 : i32
    %c0_i32_1 = arith.constant 0 : i32
    %c0_i32_2 = arith.constant 0 : i32
    return %c0_i32, %c0_i32_0, %c0_i32_1 : i32, i32, i32
  }
  func.func @transform_2(%arg0: i32, %arg1: memref<8xi32, #tpu.memory_space<smem>>, %arg2: memref<8xi32, #tpu.memory_space<smem>>, %arg3: memref<8xi32, #tpu.memory_space<smem>>) -> (i32, i32, i32) {
    %c0_i32 = arith.constant 0 : i32
    %c0_i32_0 = arith.constant 0 : i32
    %c0_i32_1 = arith.constant 0 : i32
    %c0_i32_2 = arith.constant 0 : i32
    return %c0_i32, %c0_i32_0, %c0_i32_1 : i32, i32, i32
  }
  func.func @transform_3(%arg0: i32, %arg1: memref<8xi32, #tpu.memory_space<smem>>, %arg2: memref<8xi32, #tpu.memory_space<smem>>, %arg3: memref<8xi32, #tpu.memory_space<smem>>) -> (i32, i32) {
    %c0_i32 = arith.constant 0 : i32
    %c0_i32_0 = arith.constant 0 : i32
    %c0_i32_1 = arith.constant 0 : i32
    return %c0_i32, %c0_i32_0 : i32, i32
  }
  func.func @transform_4(%arg0: i32, %arg1: memref<8xi32, #tpu.memory_space<smem>>, %arg2: memref<8xi32, #tpu.memory_space<smem>>, %arg3: memref<8xi32, #tpu.memory_space<smem>>) -> (i32, i32) {
    %c0_i32 = arith.constant 0 : i32
    %c0_i32_0 = arith.constant 0 : i32
    %c0_i32_1 = arith.constant 0 : i32
    return %c0_i32, %c0_i32_0 : i32, i32
  }
  func.func @transform_5(%arg0: i32, %arg1: memref<8xi32, #tpu.memory_space<smem>>, %arg2: memref<8xi32, #tpu.memory_space<smem>>, %arg3: memref<8xi32, #tpu.memory_space<smem>>) -> (i32, i32, i32, i32) {
    %c0_i32 = arith.constant 0 : i32
    %c0_i32_0 = arith.constant 0 : i32
    %c0_i32_1 = arith.constant 0 : i32
    %c0_i32_2 = arith.constant 0 : i32
    return %arg0, %c0_i32, %c0_i32_0, %c0_i32_1 : i32, i32, i32, i32
  }
  func.func @transform_6(%arg0: i32, %arg1: memref<8xi32, #tpu.memory_space<smem>>, %arg2: memref<8xi32, #tpu.memory_space<smem>>, %arg3: memref<8xi32, #tpu.memory_space<smem>>) -> (i32, i32, i32, i32) {
    %c0_i32 = arith.constant 0 : i32
    %c0_i32_0 = arith.constant 0 : i32
    %c0_i32_1 = arith.constant 0 : i32
    %c0_i32_2 = arith.constant 0 : i32
    return %arg0, %c0_i32, %c0_i32_0, %c0_i32_1 : i32, i32, i32, i32
  }
  func.func @transform_7(%arg0: i32, %arg1: memref<8xi32, #tpu.memory_space<smem>>, %arg2: memref<8xi32, #tpu.memory_space<smem>>, %arg3: memref<8xi32, #tpu.memory_space<smem>>) -> (i32, i32, i32, i32) {
    %c0_i32 = arith.constant 0 : i32
    %c0_i32_0 = arith.constant 0 : i32
    %c0_i32_1 = arith.constant 0 : i32
    %c0_i32_2 = arith.constant 0 : i32
    return %arg0, %c0_i32, %c0_i32_0, %c0_i32_1 : i32, i32, i32, i32
  }
  func.func @transform_8(%arg0: i32, %arg1: memref<8xi32, #tpu.memory_space<smem>>, %arg2: memref<8xi32, #tpu.memory_space<smem>>, %arg3: memref<8xi32, #tpu.memory_space<smem>>) -> (i32, i32, i32) {
    %c0_i32 = arith.constant 0 : i32
    %c0_i32_0 = arith.constant 0 : i32
    %c0_i32_1 = arith.constant 0 : i32
    return %arg0, %c0_i32, %c0_i32_0 : i32, i32, i32
  }
  func.func @transform_9(%arg0: i32, %arg1: memref<8xi32, #tpu.memory_space<smem>>, %arg2: memref<8xi32, #tpu.memory_space<smem>>, %arg3: memref<8xi32, #tpu.memory_space<smem>>) -> (i32, i32, i32) {
    %c0_i32 = arith.constant 0 : i32
    %c0_i32_0 = arith.constant 0 : i32
    %c0_i32_1 = arith.constant 0 : i32
    return %arg0, %c0_i32, %c0_i32_0 : i32, i32, i32
  }
  func.func @transform_10(%arg0: i32, %arg1: memref<8xi32, #tpu.memory_space<smem>>, %arg2: memref<8xi32, #tpu.memory_space<smem>>, %arg3: memref<8xi32, #tpu.memory_space<smem>>) -> (i32, i32, i32) {
    %c0_i32 = arith.constant 0 : i32
    %c0_i32_0 = arith.constant 0 : i32
    %c0_i32_1 = arith.constant 0 : i32
    return %arg0, %c0_i32, %c0_i32_0 : i32, i32, i32
  }
  func.func @transform_11(%arg0: i32, %arg1: memref<8xi32, #tpu.memory_space<smem>>, %arg2: memref<8xi32, #tpu.memory_space<smem>>, %arg3: memref<8xi32, #tpu.memory_space<smem>>) -> (i32, i32, i32) {
    %c0_i32 = arith.constant 0 : i32
    %c0_i32_0 = arith.constant 0 : i32
    %c0_i32_1 = arith.constant 0 : i32
    return %arg0, %c0_i32, %c0_i32_0 : i32, i32, i32
  }
  func.func @transform_12(%arg0: i32, %arg1: memref<8xi32, #tpu.memory_space<smem>>, %arg2: memref<8xi32, #tpu.memory_space<smem>>, %arg3: memref<8xi32, #tpu.memory_space<smem>>) -> (i32, i32, i32) {
    %c0_i32 = arith.constant 0 : i32
    %c0_i32_0 = arith.constant 0 : i32
    %c0_i32_1 = arith.constant 0 : i32
    return %arg0, %c0_i32, %c0_i32_0 : i32, i32, i32
  }
  func.func @transform_13(%arg0: i32, %arg1: memref<8xi32, #tpu.memory_space<smem>>, %arg2: memref<8xi32, #tpu.memory_space<smem>>, %arg3: memref<8xi32, #tpu.memory_space<smem>>) -> (i32, i32, i32) {
    %c0_i32 = arith.constant 0 : i32
    %c0_i32_0 = arith.constant 0 : i32
    %c0_i32_1 = arith.constant 0 : i32
    return %arg0, %c0_i32, %c0_i32_0 : i32, i32, i32
  }
  func.func @transform_14(%arg0: i32, %arg1: memref<8xi32, #tpu.memory_space<smem>>, %arg2: memref<8xi32, #tpu.memory_space<smem>>, %arg3: memref<8xi32, #tpu.memory_space<smem>>) -> (i32, i32, i32) {
    %c0_i32 = arith.constant 0 : i32
    %c0_i32_0 = arith.constant 0 : i32
    %c0_i32_1 = arith.constant 0 : i32
    return %arg0, %c0_i32, %c0_i32_0 : i32, i32, i32
  }
  func.func @transform_15(%arg0: i32, %arg1: memref<8xi32, #tpu.memory_space<smem>>, %arg2: memref<8xi32, #tpu.memory_space<smem>>, %arg3: memref<8xi32, #tpu.memory_space<smem>>) -> (i32, i32, i32) {
    %c0_i32 = arith.constant 0 : i32
    %c0_i32_0 = arith.constant 0 : i32
    %c0_i32_1 = arith.constant 0 : i32
    return %arg0, %c0_i32, %c0_i32_0 : i32, i32, i32
  }
  func.func @transform_16(%arg0: i32, %arg1: memref<8xi32, #tpu.memory_space<smem>>, %arg2: memref<8xi32, #tpu.memory_space<smem>>, %arg3: memref<8xi32, #tpu.memory_space<smem>>) -> (i32, i32, i32) {
    %c0_i32 = arith.constant 0 : i32
    %c0_i32_0 = arith.constant 0 : i32
    %c0_i32_1 = arith.constant 0 : i32
    return %arg0, %c0_i32, %c0_i32_0 : i32, i32, i32
  }
  func.func @transform_17(%arg0: i32, %arg1: memref<8xi32, #tpu.memory_space<smem>>, %arg2: memref<8xi32, #tpu.memory_space<smem>>, %arg3: memref<8xi32, #tpu.memory_space<smem>>) -> (i32, i32) {
    %c0_i32 = arith.constant 0 : i32
    %c0_i32_0 = arith.constant 0 : i32
    %c0_i32_1 = arith.constant 0 : i32
    return %c0_i32, %c0_i32_0 : i32, i32
  }
}

</mosaic_0001>

<bundles_post_ra>
// kernel: bert_forward.1
= control target key start
LH: loop header
LB: loop body
LE: loop exit
PB: predicated region body
PF: predicated region fallthrough
CT: control target
= control target key end

     0   :  { %s3678_s0 = inlined_call_operand.vmem [shape: s32[8], index: 0, kind: input, shape index: {}]   ;;  %s3679_s3 = inlined_call_operand.vmem [shape: f32[100,1,32], index: 3, kind: input, shape index: {}]   ;;  %s3680_s4 = inlined_call_operand.vmem [shape: f32[64,1,32], index: 4, kind: input, shape index: {}]   ;;  %s3681_s5 = inlined_call_operand.vmem [shape: f32[2,1,32], index: 5, kind: input, shape index: {}]   ;;  %s3682_s6 = inlined_call_operand.vmem [shape: f32[1,32], index: 6, kind: input, shape index: {}]   ;;  %s3683_s7 = inlined_call_operand.vmem [shape: f32[1,32], index: 7, kind: input, shape index: {}]   ;;  %s3684_s8 = inlined_call_operand.vmem [shape: f32[1,12,32,8], index: 8, kind: input, shape index: {}]   ;;  %s3685_s9 = inlined_call_operand.vmem [shape: f32[1,12,1,8], index: 9, kind: input, shape index: {}]   ;;  %s3686_s10 = inlined_call_operand.vmem [shape: f32[1,4,8,32], index: 10, kind: input, shape index: {}]   ;;  %s3687_s11 = inlined_call_operand.vmem [shape: f32[1,1,32], index: 11, kind: input, shape index: {}]   ;;  %s3688_s12 = inlined_call_operand.vmem [shape: f32[1,1,32], index: 12, kind: input, shape index: {}]   ;;  %s3689_s13 = inlined_call_operand.vmem [shape: f32[1,1,32], index: 13, kind: input, shape index: {}]   ;;  %s3690_s14 = inlined_call_operand.vmem [shape: f32[1,32,64], index: 14, kind: input, shape index: {}]   ;;  %s3691_s15 = inlined_call_operand.vmem [shape: f32[1,1,64], index: 15, kind: input, shape index: {}]   ;;  %s3692_s16 = inlined_call_operand.vmem [shape: f32[1,64,32], index: 16, kind: input, shape index: {}]   ;;  %s3693_s17 = inlined_call_operand.vmem [shape: f32[1,1,32], index: 17, kind: input, shape index: {}]   ;;  %s3694_s18 = inlined_call_operand.vmem [shape: f32[1,1,32], index: 18, kind: input, shape index: {}]   ;;  %s3695_s19 = inlined_call_operand.vmem [shape: f32[1,1,32], index: 19, kind: input, shape index: {}]   ;;  %s3696_s20 = inlined_call_operand.hbm [shape: f32[6,32], index: 20, kind: output, shape index: {}]   ;;  %s3697_s1 = inlined_call_operand.vmem [shape: s32[8], index: 1, kind: input, shape index: {}]   ;;  %s3698_s2 = inlined_call_operand.vmem [shape: s32[8], index: 2, kind: input, shape index: {}]  }
   0x1   :  { %3702 = sst [smem:[#allocation12_spill]] %s3678_s0  ;;  %s29_s25 = sshll.u32 %s3697_s1, 4  ;;  %s30_s25 = int_to_ptr.vmem [resolvable:$true] %s29_s25 }
   0x2   :  { %3703 = sst [smem:[#allocation13_spill]] %s3679_s3 }
   0x3   :  { %3704 = sst [smem:[#allocation14_spill]] %s3680_s4 }
   0x4   :  { %3705 = sst [smem:[#allocation15_spill]] %s3681_s5 }
   0x5   :  { %3706 = sst [smem:[#allocation16_spill]] %s3682_s6 }
   0x6   :  { %3707 = sst [smem:[#allocation17_spill]] %s3691_s15 }
   0x7   :  { %3708 = sst [smem:[#allocation18_spill]] %s3694_s18 }
   0x8   :  { %3709 = sst [smem:[#allocation19_spill]] %s3695_s19 }
   0x9   :  { %3710 = sst [smem:[#allocation20_spill]] %s3696_s20 }
   0xa   :  { %s3711_s23 = sld [smem:[#allocation12_spill]] }
  0x10   :  { %s25_s15 = sshll.u32 %s3711_s23, 4  ;;  %s26_s15 = int_to_ptr.vmem [resolvable:$true] %s25_s15 }
  0x11   :  { %s2934_s5 = scalar_lea.vmem %s26_s15, 16  ;;  %p2939_p1 = scmp.lt.s32.totalorder %s26_s15, %s26_s15 }
  0x12   :  { %p2935_p0 = scmp.ne.s32.totalorder %s26_s15, %s2934_s5  ;;  %p2940_p2 = scmp.lt.s32.totalorder %s2934_s5, %s2934_s5 }
  0x14   :  { %p2941_p3 = por %p2940_p2, %p2939_p1 }
  0x16   :  { %p2942_p4 = pnand %p2941_p3, %p2935_p0 }
  0x18   :  { %2945 = shalt.err (!%p2942_p4)  }
  0x19   :  { %s2994_s26 = smov [#allocation5]   ;;  %s2946_s27 = scalar_lea.vmem %s30_s25, 16 }
  0x1a   :  { %28 = dma.vmem_to_smem %s26_s15, 16, %s2994_s26, [#allocation4] }
  0x1b   :  { %p2947_p5 = scmp.ne.s32.totalorder %s30_s25, %s2946_s27  ;;  %p2951_p6 = scmp.lt.s32.totalorder %s30_s25, %s30_s25 }
  0x1c   :  { %p2952_p7 = scmp.lt.s32.totalorder %s2946_s27, %s2946_s27 }
  0x1e   :  { %p2953_p8 = por %p2952_p7, %p2951_p6 }
  0x20   :  { %p2954_p9 = pnand %p2953_p8, %p2947_p5 }
  0x22   :  { %2957 = shalt.err (!%p2954_p9)  }
  0x23   :  { %s2995_s28 = smov [#allocation6]   ;;  %s33_s29 = sshll.u32 %s3698_s2, 4  ;;  %s34_s29 = int_to_ptr.vmem [resolvable:$true] %s33_s29 }
  0x24   :  { %32 = dma.vmem_to_smem %s30_s25, 16, %s2995_s28, [#allocation4] }
  0x25   :  { %s2958_s30 = scalar_lea.vmem %s34_s29, 16  ;;  %p2963_p11 = scmp.lt.s32.totalorder %s34_s29, %s34_s29 }
  0x26   :  { %p2959_p10 = scmp.ne.s32.totalorder %s34_s29, %s2958_s30  ;;  %p2964_p12 = scmp.lt.s32.totalorder %s2958_s30, %s2958_s30 }
  0x28   :  { %p2965_p13 = por %p2964_p12, %p2963_p11 }
  0x2a   :  { %p2966_p0 = pnand %p2965_p13, %p2959_p10 }
  0x2c   :  { %2969 = shalt.err (!%p2966_p0)  }
  0x2d   :  { %s2996_s15 = smov [#allocation7]  }
  0x2e   :  { %36 = dma.vmem_to_smem %s34_s29, 16, %s2996_s15, [#allocation4] }
  0x2f   :  { %2990 = dma.done.wait [#allocation4], 48 }
  0x30   :  { %2991 = vsyncadd [#allocation4], 4294967248 }
  0x31   :  { %38 = sfence }
  0x32   :  { %s78_s0 = sld [smem:[#allocation5]] }
  0x33   :  { %s79_s21 = sld [smem:[#allocation6]] }
  0x34   :  { %s2501_s3 = sld [smem:[#allocation5 + $0x1]] }
  0x35   :  { %s2502_s22 = sld [smem:[#allocation6 + $0x1]] }
  0x36   :  { %s2504_s23 = sld [smem:[#allocation5 + $0x2]] }
  0x37   :  { %39 = vsyncpa [#allocation9], 0  ;;  %s3712_s4 = sld [smem:[#allocation14_spill]]  ;;  %vm87_vm0 = vcmask 253952   ;;  %vm169_vm1 = vcmask 261120   ;;  %v2997_v47 = vmov 0.0  }
  0x38   :  { %s2505_s25 = sld [smem:[#allocation6 + $0x2]]  ;;  %2679 = vmatprep.subr.mxu0 %v2997_v47  ;;  %2690 = vmatprep.subr.mxu1 %v2997_v47  ;;  %v263_v48 = vld [vmem:[%s3684_s8 + $0x18] sm:$0xff]  ;;  %v262_v50 = vld [vmem:[%s3684_s8 + $0x10] sm:$0xff]  ;;  %v261_v52 = vld [vmem:[%s3684_s8 + $0x8] sm:$0xff]  ;;  %vm2998_vm2 = vmmov 0   ;;  %vm1236_vm3 = vcmask 64512  }
  0x39   :  { %s3713_s27 = sld [smem:[#allocation13_spill]]  ;;  %v267_v49 = vld [vmem:[%s3684_s8 + $0x38] sm:$0xff]  ;;  %2680 = vmatpush3.msra.mxu0 %v263_v48  ;;  %v266_v51 = vld [vmem:[%s3684_s8 + $0x30] sm:$0xff]  ;;  %v265_v53 = vld [vmem:[%s3684_s8 + $0x28] sm:$0xff]  ;;  %2687 = vmatprep.mubr.msk.f32.mxu0 %vm2998_vm2, %v2997_v47  ;;  %vm257_vm12 = vcmask 57344   ;;  %vm2360_vm14 = vcmask 523264  }
  0x3a   :  { %s3121_s1 = sld [smem:[#allocation5 + $0x3]]  ;;  %2691 = vmatpush3.msra.mxu1 %v267_v49  ;;  %2681 = vmatprep.subr.mxu0 %v2997_v47  ;;  %v260_v54 = vld [vmem:[%s3684_s8] sm:$0xff]  ;;  %vm2469_vm15 = vcmask 259072  }
  0x3b   :  { %s3714_s30 = sld [smem:[#allocation15_spill]]  ;;  %2692 = vmatprep.subr.mxu1 %v2997_v47  ;;  %2682 = vmatpush3.msra.mxu0 %v262_v50  ;;  %v264_v55 = vld [vmem:[%s3684_s8 + $0x20] sm:$0xff] }
  0x3c   :  { %s3129_s18 = sld [smem:[#allocation6 + $0x3]]  ;;  %2693 = vmatpush3.msra.mxu1 %v266_v51  ;;  %2683 = vmatprep.subr.mxu0 %v2997_v47  ;;  %v2523_v62 = vld [vmem:[%s3683_s7] ss:$0 sm:$0xff]  ;;  %v2535_v51 = vld [vmem:[%s3685_s9 + $0x4] ss:$0 sm:$0xff] }
  0x3d   :  { %v82_v0 = vld [vmem:[%s3712_s4] sm:$0x1]  ;;  %v2503_v2 = vld [vmem:[%s3712_s4 + $0x1] sm:$0x1]  ;;  %s3134_s5 = sld [smem:[#allocation5 + $0x4]]  ;;  %2694 = vmatprep.subr.mxu1 %v2997_v47  ;;  %2684 = vmatpush3.msra.mxu0 %v261_v52 }
  0x3e   :  { %v2506_v6 = vld [vmem:[%s3712_s4 + $0x2] sm:$0x1]  ;;  %s3142_s19 = sld [smem:[#allocation6 + $0x4]]  ;;  %v2509_v11 = vld [vmem:[%s3712_s4 + $0x3] sm:$0x1]  ;;  %2695 = vmatpush3.msra.mxu1 %v265_v53  ;;  %2685 = vmatprep.subr.mxu0 %v2997_v47 }
  0x3f   :  { %s80_s28 = scalar_lea.vmem %s3713_s27, %s78_s0  ;;  %s91_s0 = scalar_lea.vmem %s3713_s27, %s2501_s3  ;;  %v2512_v16 = vld [vmem:[%s3712_s4 + $0x4] sm:$0x1]  ;;  %v2515_v21 = vld [vmem:[%s3712_s4 + $0x5] sm:$0x1]  ;;  %v2518_v26 = vld [vmem:[%s3712_s4 + $0x6] sm:$0x1]  ;;  %2696 = vmatprep.subr.mxu1 %v2997_v47  ;;  %2686 = vmatpush3.msra.mxu0 %v260_v54 }
  0x40   :  { %v81_v1 = vld [vmem:[%s80_s28] sm:$0x1]  ;;  %s3147_s2 = sld [smem:[#allocation5 + $0x5]]  ;;  %s113_s29 = scalar_lea.vmem %s3713_s27, %s3121_s1  ;;  %v2521_v31 = vld [vmem:[%s3712_s4 + $0x7] sm:$0x1]  ;;  %2697 = vmatpush3.msra.mxu1 %v264_v55  ;;  %2698 = vmatprep.mubr.msk.f32.mxu1 %vm2998_vm2, %v2997_v47 }
  0x41   :  { %s84_s15 = scalar_lea.vmem %s3714_s30, %s79_s21  ;;  %v83_v3 = vadd.f32 %v82_v0, %v81_v1  ;;  %v92_v5 = vld [vmem:[%s91_s0] sm:$0x1]  ;;  %s96_s21 = scalar_lea.vmem %s3714_s30, %s2502_s22  ;;  %2701 = vmatprep.subr.mxu0 %v2997_v47  ;;  %2712 = vmatprep.subr.mxu1 %v2997_v47  ;;  %v271_v1 = vld [vmem:[%s3684_s8 + $0x58] sm:$0xff] }
  0x42   :  { %v85_v4 = vld [vmem:[%s84_s15] sm:$0x1]  ;;  %v95_v8 = vadd.f32 %v2503_v2, %v92_v5  ;;  %s102_s15 = scalar_lea.vmem %s3713_s27, %s2504_s23  ;;  %s107_s0 = scalar_lea.vmem %s3714_s30, %s2505_s25  ;;  %v275_v2 = vld [vmem:[%s3684_s8 + $0x78] sm:$0xff]  ;;  %v274_v5 = vld [vmem:[%s3684_s8 + $0x70] sm:$0xff] }
  0x43   :  { %v86_v7 = vadd.f32 %v85_v4, %v83_v3  ;;  %v97_v9 = vld [vmem:[%s96_s21] sm:$0x1]  ;;  %s3155_s6 = sld [smem:[#allocation6 + $0x5]]  ;;  %s124_s28 = scalar_lea.vmem %s3713_s27, %s3134_s5  ;;  %v270_v4 = vld [vmem:[%s3684_s8 + $0x50] sm:$0xff] }
  0x44   :  { %v103_v10 = vld [vmem:[%s102_s15] sm:$0x1]  ;;  %v98_v12 = vadd.f32 %v97_v9, %v95_v8  ;;  %s2516_s20 = sld [smem:[#allocation5 + $0x6]]  ;;  %s118_s15 = scalar_lea.vmem %s3714_s30, %s3129_s18 }
  0x45   :  { %88 = vst.msk [vmem:[#allocation2] sm:$0x1] %vm87_vm0, %v86_v7  ;;  %v106_v13 = vadd.f32 %v2506_v6, %v103_v10  ;;  %v108_v14 = vld [vmem:[%s107_s0] sm:$0x1]  ;;  %s3169_s26 = sld [smem:[#allocation6 + $0x6]]  ;;  %v269_v6 = vld [vmem:[%s3684_s8 + $0x48] sm:$0xff] }
  0x46   :  { %v114_v15 = vld [vmem:[%s113_s29] sm:$0x1]  ;;  %99 = vst.msk [vmem:[#allocation2 + $0x1] sm:$0x1] %vm87_vm0, %v98_v12  ;;  %s2519_s23 = sld [smem:[#allocation5 + $0x7]]  ;;  %s129_s29 = scalar_lea.vmem %s3714_s30, %s3142_s19  ;;  %v273_v7 = vld [vmem:[%s3684_s8 + $0x68] sm:$0xff] }
  0x47   :  { %v109_v17 = vadd.f32 %v108_v14, %v106_v13  ;;  %v117_v18 = vadd.f32 %v2509_v11, %v114_v15  ;;  %v119_v19 = vld [vmem:[%s118_s15] sm:$0x1]  ;;  %s2520_s24 = sld [smem:[#allocation6 + $0x7]]  ;;  %s135_s5 = scalar_lea.vmem %s3713_s27, %s3147_s2  ;;  %v279_v10 = vld [vmem:[%s3684_s8 + $0x98] sm:$0xff]  ;;  %v278_v12 = vld [vmem:[%s3684_s8 + $0x90] sm:$0xff] }
  0x48   :  { %v125_v20 = vld [vmem:[%s124_s28] sm:$0x1]  ;;  %v283_v11 = vld [vmem:[%s3684_s8 + $0xb8] sm:$0xff]  ;;  %v282_v13 = vld [vmem:[%s3684_s8 + $0xb0] sm:$0xff]  ;;  %s201_s2 = sld [smem:[#allocation7]] }
  0x49   :  { %110 = vst.msk [vmem:[#allocation2 + $0x2] sm:$0x1] %vm87_vm0, %v109_v17  ;;  %v120_v22 = vadd.f32 %v119_v19, %v117_v18  ;;  %v128_v23 = vadd.f32 %v2512_v16, %v125_v20  ;;  %v130_v24 = vld [vmem:[%s129_s29] sm:$0x1]  ;;  %s140_s19 = scalar_lea.vmem %s3714_s30, %s3155_s6  ;;  %v277_v14 = vld [vmem:[%s3684_s8 + $0x88] sm:$0xff]  ;;  %v287_v18 = vld [vmem:[%s3684_s8 + $0xd8] sm:$0xff] }
  0x4a   :  { %v136_v25 = vld [vmem:[%s135_s5] sm:$0x1]  ;;  %s146_s25 = scalar_lea.vmem %s3713_s27, %s2516_s20  ;;  %s3715_s20 = sld [smem:[#allocation16_spill]]  ;;  %v281_v15 = vld [vmem:[%s3684_s8 + $0xa8] sm:$0xff]  ;;  %v291_v19 = vld [vmem:[%s3684_s8 + $0xf8] sm:$0xff] }
  0x4b   :  { %121 = vst.msk [vmem:[#allocation2 + $0x3] sm:$0x1] %vm87_vm0, %v120_v22  ;;  %v131_v27 = vadd.f32 %v130_v24, %v128_v23  ;;  %v139_v28 = vadd.f32 %v2515_v21, %v136_v25  ;;  %v141_v29 = vld [vmem:[%s140_s19] sm:$0x1]  ;;  %s151_s15 = scalar_lea.vmem %s3714_s30, %s3169_s26  ;;  %v286_v20 = vld [vmem:[%s3684_s8 + $0xd0] sm:$0xff]  ;;  %v285_v22 = vld [vmem:[%s3684_s8 + $0xc8] sm:$0xff] }
  0x4c   :  { %v147_v30 = vld [vmem:[%s146_s25] sm:$0x1]  ;;  %s157_s0 = scalar_lea.vmem %s3713_s27, %s2519_s23  ;;  %v290_v21 = vld [vmem:[%s3684_s8 + $0xf0] sm:$0xff]  ;;  %v289_v23 = vld [vmem:[%s3684_s8 + $0xe8] sm:$0xff]  ;;  %s2524_s3 = sld [smem:[#allocation7 + $0x1]] }
  0x4d   :  { %132 = vst.msk [vmem:[#allocation2 + $0x4] sm:$0x1] %vm87_vm0, %v131_v27  ;;  %v142_v32 = vadd.f32 %v141_v29, %v139_v28  ;;  %v150_v33 = vadd.f32 %v2518_v26, %v147_v30  ;;  %v152_v34 = vld [vmem:[%s151_s15] sm:$0x1]  ;;  %s162_s28 = scalar_lea.vmem %s3714_s30, %s2520_s24  ;;  %v295_v26 = vld [vmem:[%s3684_s8 + $0x118] sm:$0xff]  ;;  %v294_v28 = vld [vmem:[%s3684_s8 + $0x110] sm:$0xff] }
  0x4e   :  { %v158_v35 = vld [vmem:[%s157_s0] sm:$0x1]  ;;  %v299_v27 = vld [vmem:[%s3684_s8 + $0x138] sm:$0xff]  ;;  %v298_v29 = vld [vmem:[%s3684_s8 + $0x130] sm:$0xff]  ;;  %s2525_s15 = sld [smem:[#allocation7 + $0x2]]  ;;  %s202_s5 = ssub.s32 1, %s201_s2 }
  0x4f   :  { %143 = vst.msk [vmem:[#allocation2 + $0x5] sm:$0x1] %vm87_vm0, %v142_v32  ;;  %v153_v36 = vadd.f32 %v152_v34, %v150_v33  ;;  %v161_v37 = vadd.f32 %v2521_v31, %v158_v35  ;;  %v163_v38 = vld [vmem:[%s162_s28] sm:$0x1]  ;;  %v293_v30 = vld [vmem:[%s3684_s8 + $0x108] sm:$0xff]  ;;  %v303_v34 = vld [vmem:[%s3684_s8 + $0x158] sm:$0xff]  ;;  %s203_s0 = scvt.s32.f32 %s202_s5 }
  0x50   :  { %v2522_v60 = vld [vmem:[%s3715_s20] ss:$0 sm:$0xff]  ;;  %v297_v31 = vld [vmem:[%s3684_s8 + $0x128] sm:$0xff]  ;;  %v307_v35 = vld [vmem:[%s3684_s8 + $0x178] sm:$0xff]  ;;  %s2527_s22 = sld [smem:[#allocation7 + $0x4]] }
  0x51   :  { %154 = vst.msk [vmem:[#allocation2 + $0x6] sm:$0x1] %vm87_vm0, %v153_v36  ;;  %v164_v39 = vadd.f32 %v163_v38, %v161_v37  ;;  %v268_v8 = vld [vmem:[%s3684_s8 + $0x40] sm:$0xff]  ;;  %v302_v36 = vld [vmem:[%s3684_s8 + $0x150] sm:$0xff]  ;;  %v301_v38 = vld [vmem:[%s3684_s8 + $0x148] sm:$0xff]  ;;  %s3529_s6 = sld [smem:[#allocation7 + $0x5]] }
  0x52   :  { %v272_v9 = vld [vmem:[%s3684_s8 + $0x60] sm:$0xff]  ;;  %v306_v37 = vld [vmem:[%s3684_s8 + $0x170] sm:$0xff]  ;;  %s3531_s1 = sld [smem:[#allocation7 + $0x6]]  ;;  %s209_s20 = ssub.s32 1, %s2524_s3 }
  0x53   :  { %165 = vst.msk [vmem:[#allocation2 + $0x7] sm:$0x1] %vm87_vm0, %v164_v39  ;;  %v276_v16 = vld [vmem:[%s3684_s8 + $0x80] sm:$0xff]  ;;  %v305_v39 = vld [vmem:[%s3684_s8 + $0x168] sm:$0xff]  ;;  %s210_s19 = scvt.s32.f32 %s209_s20  ;;  %s204_s4 = smul.f32 -1e+09, %s203_s0 }
  0x54   :  { %v280_v17 = vld [vmem:[%s3684_s8 + $0xa0] sm:$0xff]  ;;  %s216_s28 = ssub.s32 1, %s2525_s15  ;;  %s2530_s5 = sld [smem:[#allocation7 + $0x7]] }
  0x55   :  { %v284_v24 = vld [vmem:[%s3684_s8 + $0xc0] sm:$0xff]  ;;  %s217_s27 = scvt.s32.f32 %s216_s28  ;;  %s211_s30 = smul.f32 -1e+09, %s210_s19 }
  0x56   :  { %v288_v25 = vld [vmem:[%s3684_s8 + $0xe0] sm:$0xff]  ;;  %s230_s24 = ssub.s32 1, %s2527_s22 }
  0x57   :  { %v292_v32 = vld [vmem:[%s3684_s8 + $0x100] sm:$0xff]  ;;  %s218_s7 = smul.f32 -1e+09, %s217_s27  ;;  %s237_s18 = ssub.s32 1, %s3529_s6 }
  0x58   :  { %v296_v33 = vld [vmem:[%s3684_s8 + $0x120] sm:$0xff]  ;;  %s231_s29 = scvt.s32.f32 %s230_s24  ;;  %s238_s25 = scvt.s32.f32 %s237_s18 }
  0x59   :  { %v2531_v54 = vld [vmem:[%s3685_s9] ss:$0 sm:$0xff]  ;;  %s244_s2 = ssub.s32 1, %s3531_s1 }
  0x5a   :  { %v166_v40 = vld [vmem:[#allocation2] sm:$0xff]  ;;  %s232_s3 = smul.f32 -1e+09, %s231_s29  ;;  %s245_s15 = scvt.s32.f32 %s244_s2 }
  0x5b   :  { %v170_v41 = vsel %vm169_vm1, %v166_v40, 0.0  ;;  %s251_s22 = ssub.s32 1, %s2530_s5  ;;  %s3718_s5 = sld [smem:[#allocation19_spill]] }
  0x5c   :  { %171 = vadd.xlane.f32.xlu0 %v170_v41  ;;  %v304_v41 = vld [vmem:[%s3684_s8 + $0x160] sm:$0xff]  ;;  %s246_s0 = smul.f32 -1e+09, %s245_s15  ;;  %s252_s6 = scvt.s32.f32 %s251_s22 }
  0x5e   :  { %s253_s20 = smul.f32 -1e+09, %s252_s6 }
  0xe5   :  { %v172_v42 = vpop.xlane.xlu0 %171 }
  0xe6   :  { %v174_v43 = vmul.f32 0.03125, %v172_v42 }
  0xe8   :  { %v175_v44 = vsub.f32 %v166_v40, %v174_v43  ;;  %v300_v40 = vld [vmem:[%s3684_s8 + $0x140] sm:$0xff]  ;;  %s2526_s8 = sld [smem:[#allocation7 + $0x3]] }
  0xea   :  { %v176_v45 = vmul.f32 %v175_v44, %v175_v44 }
  0xec   :  { %v177_v46 = vsel %vm169_vm1, %v176_v45, 0.0 }
  0xed   :  { %178 = vadd.xlane.f32.xlu0 %v177_v46 }
  0xee   :  { %s223_s26 = ssub.s32 1, %s2526_s8  ;;  %s239_s8 = smul.f32 -1e+09, %s238_s25 }
  0xef   :  { %s224_s23 = scvt.s32.f32 %s223_s26  ;;  %s3716_s25 = sld [smem:[#allocation17_spill]] }
  0xf1   :  { %s225_s21 = smul.f32 -1e+09, %s224_s23 }
 0x176   :  { %v179_v56 = vpop.xlane.xlu0 %178 }
 0x177   :  { %v180_v57 = vmul.f32 0.03125, %v179_v56  ;;  %v2536_v56 = vld [vmem:[%s3685_s9 + $0x5] ss:$0 sm:$0xff] }
 0x179   :  { %v181_v58 = vadd.f32 1e-12, %v180_v57 }
 0x17b   :  { %2908 = vrsqrt.f32 %v181_v58 }
 0x188   :  { %v2909_v59 = vpop.eup %2908 }
 0x189   :  { %v183_v61 = vmul.f32 %v2909_v59, %v175_v44 }
 0x18b   :  { %v190_v63 = vmul.f32 %v2522_v60, %v183_v61  ;;  %v2532_v60 = vld [vmem:[%s3685_s9 + $0x1] ss:$0 sm:$0xff] }
 0x18d   :  { %v197_v0 = vadd.f32 %v2523_v62, %v190_v63  ;;  %v2537_v63 = vld [vmem:[%s3685_s9 + $0x6] ss:$0 sm:$0xff] }
 0x18f   :  { %198 = vst.msk [vmem:[#allocation2] sm:$0xff] %vm169_vm1, %v197_v0  ;;  %v2538_v0 = vld [vmem:[%s3685_s9 + $0x7] ss:$0 sm:$0xff] }
 0x196   :  { %v3269_v3 = vld [vmem:[#allocation2] sm:$0xff] }
 0x197   :  { %2688 = vmatmul.mubr.msk.f32.vlgmr.msra.gmra.mxu0 %vm169_vm1, %v3269_v3  ;;  %2699 = vmatmul.mubr.msk.f32.vlgmr.msra.gmra.mxu1 %vm169_vm1, %v3269_v3 }
 0x198   :  { %2702 = vmatpush3.msra.mxu0 %v271_v1  ;;  %2713 = vmatpush3.msra.mxu1 %v275_v2 }
 0x199   :  { %2703 = vmatprep.subr.mxu0 %v2997_v47  ;;  %2714 = vmatprep.subr.mxu1 %v2997_v47 }
 0x19a   :  { %2704 = vmatpush3.msra.mxu0 %v270_v4  ;;  %2715 = vmatpush3.msra.mxu1 %v274_v5  ;;  %v2533_v4 = vld [vmem:[%s3685_s9 + $0x2] ss:$0 sm:$0xff]  ;;  %v2534_v5 = vld [vmem:[%s3685_s9 + $0x3] ss:$0 sm:$0xff] }
 0x19b   :  { %2705 = vmatprep.subr.mxu0 %v2997_v47  ;;  %2716 = vmatprep.subr.mxu1 %v2997_v47 }
 0x19c   :  { %2706 = vmatpush3.msra.mxu0 %v269_v6  ;;  %2717 = vmatpush3.msra.mxu1 %v273_v7 }
 0x19d   :  { %2707 = vmatprep.subr.mxu0 %v2997_v47  ;;  %2718 = vmatprep.subr.mxu1 %v2997_v47 }
 0x19e   :  { %2708 = vmatpush3.msra.mxu0 %v268_v8  ;;  %2709 = vmatprep.mubr.msk.f32.mxu0 %vm2998_vm2, %v2997_v47 }
 0x19f   :  { %2719 = vmatpush3.msra.mxu1 %v272_v9  ;;  %2720 = vmatprep.mubr.msk.f32.mxu1 %vm2998_vm2, %v2997_v47 }
 0x1a0   :  { %2710 = vmatmul.mubr.msk.f32.vlgmr.msra.gmra.mxu0 %vm169_vm1, %v3269_v3  ;;  %2721 = vmatmul.mubr.msk.f32.vlgmr.msra.gmra.mxu1 %vm169_vm1, %v3269_v3 }
 0x1a1   :  { %2723 = vmatprep.subr.mxu0 %v2997_v47  ;;  %2734 = vmatprep.subr.mxu1 %v2997_v47 }
 0x1a2   :  { %2724 = vmatpush3.msra.mxu0 %v279_v10  ;;  %2735 = vmatpush3.msra.mxu1 %v283_v11 }
 0x1a3   :  { %2725 = vmatprep.subr.mxu0 %v2997_v47  ;;  %2736 = vmatprep.subr.mxu1 %v2997_v47 }
 0x1a4   :  { %2726 = vmatpush3.msra.mxu0 %v278_v12  ;;  %2737 = vmatpush3.msra.mxu1 %v282_v13  ;;  %v2539_v12 = vld [vmem:[%s3685_s9 + $0x8] ss:$0 sm:$0xff]  ;;  %v2540_v13 = vld [vmem:[%s3685_s9 + $0x9] ss:$0 sm:$0xff] }
 0x1a5   :  { %2727 = vmatprep.subr.mxu0 %v2997_v47  ;;  %2738 = vmatprep.subr.mxu1 %v2997_v47 }
 0x1a6   :  { %2728 = vmatpush3.msra.mxu0 %v277_v14  ;;  %2739 = vmatpush3.msra.mxu1 %v281_v15 }
 0x1a7   :  { %2729 = vmatprep.subr.mxu0 %v2997_v47  ;;  %2740 = vmatprep.subr.mxu1 %v2997_v47 }
 0x1a8   :  { %2730 = vmatpush3.msra.mxu0 %v276_v16  ;;  %2731 = vmatprep.mubr.msk.f32.mxu0 %vm2998_vm2, %v2997_v47 }
 0x1a9   :  { %2741 = vmatpush3.msra.mxu1 %v280_v17  ;;  %2742 = vmatprep.mubr.msk.f32.mxu1 %vm2998_vm2, %v2997_v47 }
 0x1aa   :  { %2732 = vmatmul.mubr.msk.f32.vlgmr.msra.gmra.mxu0 %vm169_vm1, %v3269_v3  ;;  %2743 = vmatmul.mubr.msk.f32.vlgmr.msra.gmra.mxu1 %vm169_vm1, %v3269_v3 }
 0x1ab   :  { %2745 = vmatprep.subr.mxu0 %v2997_v47  ;;  %2756 = vmatprep.subr.mxu1 %v2997_v47 }
 0x1ac   :  { %2746 = vmatpush3.msra.mxu0 %v287_v18  ;;  %2757 = vmatpush3.msra.mxu1 %v291_v19 }
 0x1ad   :  { %2747 = vmatprep.subr.mxu0 %v2997_v47  ;;  %2758 = vmatprep.subr.mxu1 %v2997_v47 }
 0x1ae   :  { %2748 = vmatpush3.msra.mxu0 %v286_v20  ;;  %2759 = vmatpush3.msra.mxu1 %v290_v21 }
 0x1af   :  { %2749 = vmatprep.subr.mxu0 %v2997_v47  ;;  %2760 = vmatprep.subr.mxu1 %v2997_v47 }
 0x1b0   :  { %2750 = vmatpush3.msra.mxu0 %v285_v22  ;;  %2761 = vmatpush3.msra.mxu1 %v289_v23 }
 0x1b1   :  { %2751 = vmatprep.subr.mxu0 %v2997_v47  ;;  %2762 = vmatprep.subr.mxu1 %v2997_v47 }
 0x1b2   :  { %2752 = vmatpush3.msra.mxu0 %v284_v24  ;;  %2753 = vmatprep.mubr.msk.f32.mxu0 %vm2998_vm2, %v2997_v47  ;;  %v199_v24 = vlaneseq }
 0x1b3   :  { %2763 = vmatpush3.msra.mxu1 %v288_v25  ;;  %2764 = vmatprep.mubr.msk.f32.mxu1 %vm2998_vm2, %v2997_v47 }
 0x1b4   :  { %2754 = vmatmul.mubr.msk.f32.vlgmr.msra.gmra.mxu0 %vm169_vm1, %v3269_v3  ;;  %2765 = vmatmul.mubr.msk.f32.vlgmr.msra.gmra.mxu1 %vm169_vm1, %v3269_v3  ;;  %v200_v25 = vand.u32 127, %v199_v24 }
 0x1b5   :  { %2767 = vmatprep.subr.mxu0 %v2997_v47  ;;  %2778 = vmatprep.subr.mxu1 %v2997_v47 }
 0x1b6   :  { %2768 = vmatpush3.msra.mxu0 %v295_v26  ;;  %2779 = vmatpush3.msra.mxu1 %v299_v27  ;;  %vm205_vm4 = vcmp.eq.s32.totalorder %v200_v25, 0  ;;  %v206_v26 = vstv %s204_s4  ;;  %vm212_vm5 = vcmp.eq.s32.totalorder %v200_v25, 1  ;;  %vm219_vm6 = vcmp.eq.s32.totalorder %v200_v25, 2 }
 0x1b7   :  { %2769 = vmatprep.subr.mxu0 %v2997_v47  ;;  %2780 = vmatprep.subr.mxu1 %v2997_v47  ;;  %v207_v27 = vsel %vm205_vm4, %v206_v26, 0.0  ;;  %vm226_vm7 = vcmp.eq.s32.totalorder %v200_v25, 3  ;;  %vm233_vm8 = vcmp.eq.s32.totalorder %v200_v25, 4  ;;  %vm240_vm9 = vcmp.eq.s32.totalorder %v200_v25, 5 }
 0x1b8   :  { %2770 = vmatpush3.msra.mxu0 %v294_v28  ;;  %2781 = vmatpush3.msra.mxu1 %v298_v29  ;;  %v213_v28 = vstv %s211_s30  ;;  %vm247_vm10 = vcmp.eq.s32.totalorder %v200_v25, 6  ;;  %vm254_vm11 = vcmp.eq.s32.totalorder %v200_v25, 7 }
 0x1b9   :  { %2771 = vmatprep.subr.mxu0 %v2997_v47  ;;  %2782 = vmatprep.subr.mxu1 %v2997_v47  ;;  %v214_v29 = vsel %vm212_vm5, %v213_v28, %v207_v27  ;;  %v2541_v27 = vld [vmem:[%s3685_s9 + $0xa] ss:$0 sm:$0xff] }
 0x1ba   :  { %2772 = vmatpush3.msra.mxu0 %v293_v30  ;;  %2783 = vmatpush3.msra.mxu1 %v297_v31  ;;  %v220_v30 = vstv %s218_s7 }
 0x1bb   :  { %2773 = vmatprep.subr.mxu0 %v2997_v47  ;;  %2784 = vmatprep.subr.mxu1 %v2997_v47  ;;  %v221_v31 = vsel %vm219_vm6, %v220_v30, %v214_v29 }
 0x1bc   :  { %2774 = vmatpush3.msra.mxu0 %v292_v32  ;;  %2775 = vmatprep.mubr.msk.f32.mxu0 %vm2998_vm2, %v2997_v47  ;;  %v227_v32 = vstv %s225_s21 }
 0x1bd   :  { %2785 = vmatpush3.msra.mxu1 %v296_v33  ;;  %2786 = vmatprep.mubr.msk.f32.mxu1 %vm2998_vm2, %v2997_v47  ;;  %v228_v33 = vsel %vm226_vm7, %v227_v32, %v221_v31  ;;  %v2542_v31 = vld [vmem:[%s3685_s9 + $0xb] ss:$0 sm:$0xff] }
 0x1be   :  { %2776 = vmatmul.mubr.msk.f32.vlgmr.msra.gmra.mxu0 %vm169_vm1, %v3269_v3  ;;  %2787 = vmatmul.mubr.msk.f32.vlgmr.msra.gmra.mxu1 %vm169_vm1, %v3269_v3 }
 0x1bf   :  { %2789 = vmatprep.subr.mxu0 %v2997_v47  ;;  %2800 = vmatprep.subr.mxu1 %v2997_v47 }
 0x1c0   :  { %2790 = vmatpush3.msra.mxu0 %v303_v34  ;;  %2801 = vmatpush3.msra.mxu1 %v307_v35  ;;  %v234_v34 = vstv %s232_s3  ;;  %s3717_s3 = sld [smem:[#allocation18_spill]] }
 0x1c1   :  { %2791 = vmatprep.subr.mxu0 %v2997_v47  ;;  %2802 = vmatprep.subr.mxu1 %v2997_v47  ;;  %v235_v35 = vsel %vm233_vm8, %v234_v34, %v228_v33 }
 0x1c2   :  { %2792 = vmatpush3.msra.mxu0 %v302_v36  ;;  %2803 = vmatpush3.msra.mxu1 %v306_v37  ;;  %v241_v36 = vstv %s239_s8 }
 0x1c3   :  { %2793 = vmatprep.subr.mxu0 %v2997_v47  ;;  %2804 = vmatprep.subr.mxu1 %v2997_v47  ;;  %v242_v37 = vsel %vm240_vm9, %v241_v36, %v235_v35 }
 0x1c4   :  { %2794 = vmatpush3.msra.mxu0 %v301_v38  ;;  %2805 = vmatpush3.msra.mxu1 %v305_v39  ;;  %v248_v38 = vstv %s246_s0  ;;  %s3000_s0 = smov [#allocation8]  }
 0x1c5   :  { %2795 = vmatprep.subr.mxu0 %v2997_v47  ;;  %2806 = vmatprep.subr.mxu1 %v2997_v47  ;;  %v249_v39 = vsel %vm247_vm10, %v248_v38, %v242_v37  ;;  %v1893_v38 = vld [vmem:[%s3686_s10 + $0x8] sm:$0xff]  ;;  %s2477_s22 = sshll.u32 %s3000_s0, 4  ;;  %s2478_s22 = int_to_ptr.vmem [resolvable:$true] %s2477_s22 }
 0x1c6   :  { %2796 = vmatpush3.msra.mxu0 %v300_v40  ;;  %2797 = vmatprep.mubr.msk.f32.mxu0 %vm2998_vm2, %v2997_v47  ;;  %v255_v40 = vstv %s253_s20  ;;  %s2970_s6 = scalar_lea.vmem %s2478_s22, 128  ;;  %p2975_p2 = scmp.lt.s32.totalorder %s2478_s22, %s2478_s22 }
 0x1c7   :  { %2807 = vmatpush3.msra.mxu1 %v304_v41  ;;  %2808 = vmatprep.mubr.msk.f32.mxu1 %vm2998_vm2, %v2997_v47  ;;  %v256_v41 = vsel %vm254_vm11, %v255_v40, %v249_v39  ;;  %v1894_v39 = vld [vmem:[%s3686_s10 + $0x10] sm:$0xff]  ;;  %p2971_p1 = scmp.ne.s32.totalorder %s2478_s22, %s2970_s6  ;;  %p2976_p3 = scmp.lt.s32.totalorder %s2970_s6, %s2970_s6 }
 0x1c8   :  { %2798 = vmatmul.mubr.msk.f32.vlgmr.msra.gmra.mxu0 %vm169_vm1, %v3269_v3  ;;  %2809 = vmatmul.mubr.msk.f32.vlgmr.msra.gmra.mxu1 %vm169_vm1, %v3269_v3  ;;  %258 = vst.msk [vmem:[#allocation3] sm:$0x1] %vm257_vm12, %v256_v41 }
 0x1c9   :  { %2811 = vmatprep.subr.mxu0 %v2997_v47  ;;  %2813 = vmatprep.mubr.msk.f32.mxu0 %vm2998_vm2, %v2997_v47  ;;  %p2977_p4 = por %p2976_p3, %p2975_p2 }
 0x1ca   :  { %2826 = vmatprep.subr.mxu1 %v2997_v47  ;;  %2828 = vmatprep.mubr.msk.f32.mxu1 %vm2998_vm2, %v2997_v47 }
 0x1cb   :  { %p2978_p5 = pnand %p2977_p4, %p2971_p1 }
 0x257   :  { %v462_v42 = vpop.f32.mrf.mxu0  ;;  %v532_v43 = vpop.f32.mrf.mxu1 }
 0x258   :  { %v463_v59 = vadd.f32 %v2531_v54, %v462_v42  ;;  %v533_v62 = vadd.f32 %v2532_v60, %v532_v43  ;;  %v2563_v43 = vld [vmem:[#allocation3] ss:$0 sm:$0xff] }
 0x259   :  { %v2689_v44 = vpop.f32.mrf.mxu0  ;;  %v2700_v45 = vpop.f32.mrf.mxu1 }
 0x260   :  { %v602_v46 = vpop.f32.mrf.mxu0  ;;  %v672_v48 = vpop.f32.mrf.mxu1 }
 0x261   :  { %v603_v10 = vadd.f32 %v2533_v4, %v602_v46  ;;  %v673_v11 = vadd.f32 %v2534_v5, %v672_v48 }
 0x262   :  { %v2711_v49 = vpop.f32.mrf.mxu0  ;;  %v2722_v50 = vpop.f32.mrf.mxu1 }
 0x26a   :  { %v742_v52 = vpop.f32.mrf.mxu0  ;;  %v812_v53 = vpop.f32.mrf.mxu1 }
 0x26b   :  { %v743_v55 = vadd.f32 %v2535_v51, %v742_v52  ;;  %v813_v61 = vadd.f32 %v2536_v56, %v812_v53 }
 0x26c   :  { %v2733_v57 = vpop.f32.mrf.mxu0  ;;  %v2744_v58 = vpop.f32.mrf.mxu1 }
 0x26d   :  { %2812 = vmatpush3.xpose.msk.msra.mxu0 %vm1236_vm3, %v743_v55 }
 0x26e   :  { %2816 = vmatprep.subr.mxu0 %v2997_v47 }
 0x270   :  { %2814 = vmatmul.mubr.msk.f32.vlgmr.msra.gmra.mxu0 %vm1236_vm3, %v463_v59 }
 0x271   :  { %2817 = vmatpush3.xpose.msk.msra.mxu0 %vm1236_vm3, %v813_v61  ;;  %2818 = vmatprep.mubr.msk.f32.mxu0 %vm2998_vm2, %v2997_v47 }
 0x272   :  { %2821 = vmatprep.subr.mxu0 %v2997_v47 }
 0x274   :  { %v882_v1 = vpop.f32.mrf.mxu0  ;;  %v952_v2 = vpop.f32.mrf.mxu1  ;;  %2819 = vmatmul.mubr.msk.f32.vlgmr.msra.gmra.mxu0 %vm1236_vm3, %v533_v62 }
 0x275   :  { %v883_v6 = vadd.f32 %v2537_v63, %v882_v1  ;;  %v953_v7 = vadd.f32 %v2538_v0, %v952_v2  ;;  %2823 = vmatprep.mubr.msk.f32.mxu0 %vm2998_vm2, %v2997_v47 }
 0x276   :  { %v2755_v8 = vpop.f32.mrf.mxu0  ;;  %v2766_v9 = vpop.f32.mrf.mxu1 }
 0x277   :  { %2822 = vmatpush3.xpose.msk.msra.mxu0 %vm1236_vm3, %v883_v6  ;;  %2827 = vmatpush3.xpose.msk.msra.mxu1 %vm1236_vm3, %v953_v7 }
 0x278   :  { %2831 = vmatprep.subr.mxu0 %v2997_v47  ;;  %2836 = vmatprep.subr.mxu1 %v2997_v47 }
 0x27a   :  { %2824 = vmatmul.mubr.msk.f32.vlgmr.msra.gmra.mxu0 %vm1236_vm3, %v603_v10  ;;  %2829 = vmatmul.mubr.msk.f32.vlgmr.msra.gmra.mxu1 %vm1236_vm3, %v673_v11 }
 0x27b   :  { %2833 = vmatprep.mubr.msk.f32.mxu0 %vm2998_vm2, %v2997_v47  ;;  %2838 = vmatprep.mubr.msk.f32.mxu1 %vm2998_vm2, %v2997_v47 }
 0x27e   :  { %v1022_v14 = vpop.f32.mrf.mxu0  ;;  %v1092_v15 = vpop.f32.mrf.mxu1 }
 0x27f   :  { %v1023_v16 = vadd.f32 %v2539_v12, %v1022_v14  ;;  %v1093_v17 = vadd.f32 %v2540_v13, %v1092_v15 }
 0x280   :  { %v2777_v18 = vpop.f32.mrf.mxu0  ;;  %v2788_v19 = vpop.f32.mrf.mxu1 }
 0x281   :  { %2832 = vmatpush3.msra.mxu0 %v1023_v16  ;;  %2837 = vmatpush3.msra.mxu1 %v1093_v17 }
 0x282   :  { %2841 = vmatprep.subr.mxu0 %v2997_v47  ;;  %2846 = vmatprep.subr.mxu1 %v2997_v47 }
 0x288   :  { %v3525_v20 = vpop.f32.mrf.mxu0  ;;  %v3527_v21 = vpop.f32.mrf.mxu1 }
 0x289   :  { %v1163_v30 = vadd.f32 %v2541_v27, %v3525_v20  ;;  %v1233_v34 = vadd.f32 %v2542_v31, %v3527_v21  ;;  %v1892_v21 = vld [vmem:[%s3686_s10] sm:$0xff]  ;;  %v2350_v27 = vld [vmem:[%s3692_s16 + $0x28] sm:$0xff] }
 0x28a   :  { %v2799_v22 = vpop.f32.mrf.mxu0  ;;  %v2810_v23 = vpop.f32.mrf.mxu1  ;;  %v2346_v31 = vld [vmem:[%s3692_s16 + $0x8] sm:$0xff] }
 0x330   :  { %v1309_v42 = vpop.f32.mrf.mxu0 }
 0x331   :  { %v1541_v44 = vmul.f32 0.35355338, %v1309_v42  ;;  %v1895_v42 = vld [vmem:[%s3686_s10 + $0x18] sm:$0xff] }
 0x332   :  { %v2815_v45 = vpop.f32.mrf.mxu0 }
 0x333   :  { %v1552_v46 = vadd.f32 %v2563_v43, %v1541_v44 }
 0x334   :  { %v1385_v48 = vpop.f32.mrf.mxu0 }
 0x335   :  { %v1542_v49 = vmul.f32 0.35355338, %v1385_v48  ;;  %v1556_v50 = vsel %vm1236_vm3, %v1552_v46, -inf }
 0x336   :  { %1557 = vmax.xlane.f32.xlu1 %v1556_v50  ;;  %v2820_v51 = vpop.f32.mrf.mxu0 }
 0x337   :  { %v1553_v52 = vadd.f32 %v2563_v43, %v1542_v49 }
 0x339   :  { %v1559_v53 = vsel %vm1236_vm3, %v1553_v52, -inf }
 0x33a   :  { %v1461_v54 = vpop.f32.mrf.mxu0  ;;  %v1537_v55 = vpop.f32.mrf.mxu1  ;;  %1560 = vmax.xlane.f32.xlu1 %v1559_v53 }
 0x33b   :  { %v1543_v56 = vmul.f32 0.35355338, %v1461_v54  ;;  %v1544_v57 = vmul.f32 0.35355338, %v1537_v55 }
 0x33c   :  { %v2830_v58 = vpop.f32.mrf.mxu1  ;;  %v2825_v59 = vpop.f32.mrf.mxu0 }
 0x33d   :  { %v1555_v60 = vadd.f32 %v2563_v43, %v1544_v57  ;;  %v1554_v61 = vadd.f32 %v2563_v43, %v1543_v56 }
 0x33f   :  { %v1565_v62 = vsel %vm1236_vm3, %v1555_v60, -inf  ;;  %v1562_v63 = vsel %vm1236_vm3, %v1554_v61, -inf }
 0x340   :  { %1566 = vmax.xlane.f32.xlu1 %v1565_v62  ;;  %1563 = vmax.xlane.f32.xlu0 %v1562_v63 }
 0x3bf   :  { %v1558_v0 = vpop.xlane.xlu1 %1557 }
 0x3c0   :  { %v1568_v1 = vsub.f32 %v1552_v46, %v1558_v0  ;;  %v2572_v0 = vld [vmem:[%s3687_s11] ss:$0 sm:$0xff] }
 0x3c2   :  { %v1572_v2 = vmul.f32 1.442695, %v1568_v1 }
 0x3c3   :  { %v1561_v4 = vpop.xlane.xlu1 %1560 }
 0x3c4   :  { %2910 = vpow2.f32 %v1572_v2  ;;  %v1569_v5 = vsub.f32 %v1553_v52, %v1561_v4 }
 0x3c6   :  { %v1574_v6 = vmul.f32 1.442695, %v1569_v5 }
 0x3c8   :  { %2912 = vpow2.f32 %v1574_v6 }
 0x3c9   :  { %v1567_v7 = vpop.xlane.xlu1 %1566  ;;  %v1564_v8 = vpop.xlane.xlu0 %1563 }
 0x3ca   :  { %v1571_v9 = vsub.f32 %v1555_v60, %v1567_v7  ;;  %v1570_v10 = vsub.f32 %v1554_v61, %v1564_v8 }
 0x3cc   :  { %v1578_v11 = vmul.f32 1.442695, %v1571_v9  ;;  %v1576_v12 = vmul.f32 1.442695, %v1570_v10 }
 0x3ce   :  { %2914 = vpow2.f32 %v1578_v11  ;;  %v2237_v11 = vld [vmem:[%s3690_s14 + $0x18] sm:$0xff] }
 0x3cf   :  { %2916 = vpow2.f32 %v1576_v12  ;;  %v2236_v12 = vld [vmem:[%s3690_s14 + $0x10] sm:$0xff] }
 0x3d1   :  { %v2911_v13 = vpop.eup %2910 }
 0x3d2   :  { %v1580_v14 = vsel %vm1236_vm3, %v2911_v13, 0.0 }
 0x3d3   :  { %1581 = vadd.xlane.f32.xlu0 %v1580_v14 }
 0x3d5   :  { %v2913_v15 = vpop.eup %2912 }
 0x3d6   :  { %v1583_v16 = vsel %vm1236_vm3, %v2913_v15, 0.0 }
 0x3d7   :  { %1584 = vadd.xlane.f32.xlu1 %v1583_v16 }
 0x3db   :  { %v2915_v17 = vpop.eup %2914 }
 0x3dc   :  { %v2917_v18 = vpop.eup %2916  ;;  %v1589_v19 = vsel %vm1236_vm3, %v2915_v17, 0.0 }
 0x3dd   :  { %1590 = vadd.xlane.f32.xlu1 %v1589_v19  ;;  %v1586_v22 = vsel %vm1236_vm3, %v2917_v18, 0.0 }
 0x3de   :  { %1587 = vadd.xlane.f32.xlu0 %v1586_v22  ;;  %v2574_v22 = vld [vmem:[%s3689_s13] ss:$0 sm:$0xff] }
 0x45c   :  { %v1582_v23 = vpop.xlane.xlu0 %1581 }
 0x45d   :  { %2918 = vrcp.f32 %v1582_v23 }
 0x460   :  { %v1585_v24 = vpop.xlane.xlu1 %1584 }
 0x461   :  { %2920 = vrcp.f32 %v1585_v24 }
 0x466   :  { %v1591_v25 = vpop.xlane.xlu1 %1590 }
 0x467   :  { %2922 = vrcp.f32 %v1591_v25  ;;  %v1588_v26 = vpop.xlane.xlu0 %1587  ;;  %v2352_v25 = vld [vmem:[%s3692_s16 + $0x38] sm:$0xff] }
 0x468   :  { %2924 = vrcp.f32 %v1588_v26  ;;  %v2351_v26 = vld [vmem:[%s3692_s16 + $0x30] sm:$0xff] }
 0x46a   :  { %v2919_v28 = vpop.eup %2918 }
 0x46b   :  { %v1596_v29 = vmul.f32 %v2919_v28, %v2911_v13  ;;  %v2234_v13 = vld [vmem:[%s3690_s14] sm:$0xff] }
 0x46c   :  { %v2349_v28 = vld [vmem:[%s3692_s16 + $0x20] sm:$0xff] }
 0x46d   :  { %2834 = vmatmul.mubr.msk.f32.vlgmr.msra.gmra.mxu0 %vm1236_vm3, %v1596_v29  ;;  %v2348_v29 = vld [vmem:[%s3692_s16 + $0x18] sm:$0xff] }
 0x46e   :  { %v2921_v32 = vpop.eup %2920  ;;  %2842 = vmatpush3.msra.mxu0 %v1163_v30  ;;  %2843 = vmatprep.mubr.msk.f32.mxu0 %vm2998_vm2, %v2997_v47  ;;  %v2347_v30 = vld [vmem:[%s3692_s16 + $0x10] sm:$0xff] }
 0x46f   :  { %v1597_v33 = vmul.f32 %v2921_v32, %v2913_v15  ;;  %2851 = vmatprep.subr.mxu0 %v2997_v47  ;;  %v2345_v32 = vld [vmem:[%s3692_s16] sm:$0xff] }
 0x471   :  { %2839 = vmatmul.mubr.msk.f32.vlgmr.msra.gmra.mxu1 %vm1236_vm3, %v1597_v33  ;;  %v2575_v33 = vld [vmem:[%s3716_s25] ss:$0 sm:$0xff] }
 0x472   :  { %2847 = vmatpush3.msra.mxu1 %v1233_v34  ;;  %2848 = vmatprep.mubr.msk.f32.mxu1 %vm2998_vm2, %v2997_v47 }
 0x473   :  { %2856 = vmatprep.subr.mxu1 %v2997_v47 }
 0x474   :  { %v2923_v20 = vpop.eup %2922 }
 0x475   :  { %v2925_v35 = vpop.eup %2924  ;;  %v1599_v36 = vmul.f32 %v2923_v20, %v2915_v17 }
 0x476   :  { %v1598_v37 = vmul.f32 %v2925_v35, %v2917_v18  ;;  %v2573_v18 = vld [vmem:[%s3688_s12] ss:$0 sm:$0xff] }
 0x477   :  { %2849 = vmatmul.mubr.msk.f32.vlgmr.msra.gmra.mxu1 %vm1236_vm3, %v1599_v36 }
 0x478   :  { %2844 = vmatmul.mubr.msk.f32.vlgmr.msra.gmra.mxu0 %vm1236_vm3, %v1598_v37  ;;  %2858 = vmatprep.mubr.msk.f32.mxu1 %vm2998_vm2, %v2997_v47 }
 0x479   :  { %2853 = vmatprep.mubr.msk.f32.mxu0 %vm2998_vm2, %v2997_v47  ;;  %2852 = vmatpush3.msra.mxu0 %v1892_v21 }
 0x47a   :  { %2861 = vmatprep.subr.mxu0 %v2997_v47  ;;  %2857 = vmatpush3.msra.mxu1 %v1893_v38 }
 0x47b   :  { %2866 = vmatprep.subr.mxu1 %v2997_v47 }
 0x52d   :  { %v1669_v40 = vpop.f32.mrf.mxu0 }
 0x52e   :  { %2854 = vmatmul.mubr.msk.f32.vlgmr.msra.gmra.mxu0 %vm1236_vm3, %v1669_v40 }
 0x52f   :  { %v2835_v41 = vpop.f32.mrf.mxu0  ;;  %2862 = vmatpush3.msra.mxu0 %v1894_v39  ;;  %2863 = vmatprep.mubr.msk.f32.mxu0 %vm2998_vm2, %v2997_v47 }
 0x530   :  { %2871 = vmatprep.subr.mxu0 %v2997_v47 }
 0x531   :  { %v1742_v43 = vpop.f32.mrf.mxu1 }
 0x532   :  { %2859 = vmatmul.mubr.msk.f32.vlgmr.msra.gmra.mxu1 %vm1236_vm3, %v1742_v43 }
 0x533   :  { %v2840_v44 = vpop.f32.mrf.mxu1  ;;  %2867 = vmatpush3.msra.mxu1 %v1895_v42  ;;  %2868 = vmatprep.mubr.msk.f32.mxu1 %vm2998_vm2, %v2997_v47 }
 0x534   :  { %2882 = vmatprep.subr.mxu1 %v2997_v47 }
 0x537   :  { %v1888_v45 = vpop.f32.mrf.mxu1 }
 0x538   :  { %v1815_v46 = vpop.f32.mrf.mxu0  ;;  %2869 = vmatmul.mubr.msk.f32.vlgmr.msra.gmra.mxu1 %vm1236_vm3, %v1888_v45 }
 0x539   :  { %2864 = vmatmul.mubr.msk.f32.vlgmr.msra.gmra.mxu0 %vm1236_vm3, %v1815_v46  ;;  %v2850_v48 = vpop.f32.mrf.mxu1  ;;  %2898 = vmatprep.mubr.msk.f32.mxu1 %vm2998_vm2, %v2997_v47 }
 0x53a   :  { %v2845_v49 = vpop.f32.mrf.mxu0  ;;  %2879 = vmatprep.mubr.msk.f32.mxu0 %vm2998_vm2, %v2997_v47  ;;  %2872 = vmatpush3.msra.mxu0 %v2237_v11 }
 0x53b   :  { %2873 = vmatprep.subr.mxu0 %v2997_v47  ;;  %2883 = vmatpush3.msra.mxu1 %v2352_v25 }
 0x53c   :  { %2874 = vmatpush3.msra.mxu0 %v2236_v12  ;;  %2884 = vmatprep.subr.mxu1 %v2997_v47 }
 0x53d   :  { %2875 = vmatprep.subr.mxu0 %v2997_v47  ;;  %2885 = vmatpush3.msra.mxu1 %v2351_v26 }
 0x53e   :  { %2886 = vmatprep.subr.mxu1 %v2997_v47 }
 0x53f   :  { %2887 = vmatpush3.msra.mxu1 %v2350_v27 }
 0x540   :  { %2888 = vmatprep.subr.mxu1 %v2997_v47 }
 0x541   :  { %2889 = vmatpush3.msra.mxu1 %v2349_v28 }
 0x542   :  { %2890 = vmatprep.subr.mxu1 %v2997_v47 }
 0x543   :  { %2891 = vmatpush3.msra.mxu1 %v2348_v29 }
 0x544   :  { %2892 = vmatprep.subr.mxu1 %v2997_v47 }
 0x545   :  { %2893 = vmatpush3.msra.mxu1 %v2347_v30 }
 0x546   :  { %2894 = vmatprep.subr.mxu1 %v2997_v47 }
 0x547   :  { %2895 = vmatpush3.msra.mxu1 %v2346_v31 }
 0x548   :  { %2896 = vmatprep.subr.mxu1 %v2997_v47 }
 0x549   :  { %2897 = vmatpush3.msra.mxu1 %v2345_v32 }
 0x5ee   :  { %v1965_v50 = vpop.f32.mrf.mxu0 }
 0x5ef   :  { %v2188_v55 = vsel %vm169_vm1, %v1965_v50, 0.0 }
 0x5f0   :  { %v2855_v51 = vpop.f32.mrf.mxu0 }
 0x5f2   :  { %v2038_v52 = vpop.f32.mrf.mxu1 }
 0x5f3   :  { %v2189_v54 = vsel %vm169_vm1, %v2038_v52, 0.0 }
 0x5f4   :  { %v2860_v53 = vpop.f32.mrf.mxu1  ;;  %v2190_v57 = vadd.f32 %v2189_v54, %v2188_v55  ;;  %v2999_v55 = vmov 1.0  }
 0x5f8   :  { %v2184_v56 = vpop.f32.mrf.mxu1 }
 0x5f9   :  { %v2111_v58 = vpop.f32.mrf.mxu0  ;;  %v2193_v63 = vsel %vm169_vm1, %v2184_v56, 0.0 }
 0x5fa   :  { %v2191_v59 = vsel %vm169_vm1, %v2111_v58, 0.0  ;;  %v2870_v60 = vpop.f32.mrf.mxu1 }
 0x5fb   :  { %v2192_v61 = vadd.f32 %v2191_v59, %v2190_v57  ;;  %v2865_v62 = vpop.f32.mrf.mxu0 }
 0x5fd   :  { %v2194_v1 = vadd.f32 %v2193_v63, %v2192_v61  ;;  %v2577_v61 = vld [vmem:[%s3693_s17] ss:$0 sm:$0xff] }
 0x5ff   :  { %v2202_v2 = vadd.f32 %v2572_v0, %v2194_v1 }
 0x601   :  { %v2203_v4 = vadd.f32 %v2202_v2, %v3269_v3  ;;  %v2235_v3 = vld [vmem:[%s3690_s14 + $0x8] sm:$0xff] }
 0x602   :  { %2876 = vmatpush3.msra.mxu0 %v2235_v3  ;;  %v2579_v3 = vld [vmem:[%s3717_s3] ss:$0 sm:$0xff] }
 0x603   :  { %v2206_v5 = vsel %vm169_vm1, %v2203_v4, 0.0  ;;  %2877 = vmatprep.subr.mxu0 %v2997_v47 }
 0x604   :  { %2207 = vadd.xlane.f32.xlu0 %v2206_v5  ;;  %2878 = vmatpush3.msra.mxu0 %v2234_v13 }
 0x68d   :  { %v2208_v6 = vpop.xlane.xlu0 %2207 }
 0x68e   :  { %v2210_v7 = vmul.f32 0.03125, %v2208_v6 }
 0x690   :  { %v2211_v8 = vsub.f32 %v2203_v4, %v2210_v7 }
 0x692   :  { %v2212_v9 = vmul.f32 %v2211_v8, %v2211_v8 }
 0x694   :  { %v2213_v10 = vsel %vm169_vm1, %v2212_v9, 0.0 }
 0x695   :  { %2214 = vadd.xlane.f32.xlu1 %v2213_v10 }
 0x71e   :  { %v2215_v14 = vpop.xlane.xlu1 %2214 }
 0x71f   :  { %v2216_v15 = vmul.f32 0.03125, %v2215_v14  ;;  %v2580_v14 = vld [vmem:[%s3718_s5] ss:$0 sm:$0xff] }
 0x721   :  { %v2217_v16 = vadd.f32 1e-12, %v2216_v15 }
 0x723   :  { %2926 = vrsqrt.f32 %v2217_v16 }
 0x730   :  { %v2927_v17 = vpop.eup %2926 }
 0x731   :  { %v2219_v19 = vmul.f32 %v2927_v17, %v2211_v8 }
 0x733   :  { %v2226_v23 = vmul.f32 %v2573_v18, %v2219_v19 }
 0x735   :  { %v3624_v24 = vadd.f32 %v2574_v22, %v2226_v23 }
 0x737   :  { %2880 = vmatmul.mubr.msk.f32.vlgmr.msra.gmra.mxu0 %vm169_vm1, %v3624_v24 }
 0x7f7   :  { %v2314_v34 = vpop.f32.mrf.mxu0 }
 0x7f8   :  { %v2315_v20 = vadd.f32 %v2575_v33, %v2314_v34 }
 0x7f9   :  { %v2881_v35 = vpop.f32.mrf.mxu0 }
 0x7fa   :  { %v2319_v36 = vmul.f32 0.70710677, %v2315_v20  ;;  %v2318_v58 = vmul.f32 0.5, %v2315_v20 }
 0x7fc   :  { %v2322_v37 = vand.u32 2147483647, %v2319_v36  ;;  %vm2320_vm13 = vcmp.lt.f32.partialorder %v2319_v36, 0.0 }
 0x7fd   :  { %v2321_v56 = vsel %vm2320_vm13, -1.0, %v2999_v55 }
 0x7fe   :  { %v2323_v21 = vmul.f32 0.3275911, %v2322_v37  ;;  %v2336_v39 = vsub.f32 0.0, %v2322_v37 }
 0x800   :  { %v2324_v38 = vadd.f32 1.0, %v2323_v21  ;;  %v2337_v40 = vmul.f32 %v2336_v39, %v2322_v37 }
 0x802   :  { %2928 = vrcp.f32 %v2324_v38  ;;  %v2338_v43 = vmul.f32 1.442695, %v2337_v40 }
 0x804   :  { %2930 = vpow2.f32 %v2338_v43 }
 0x80f   :  { %v2929_v41 = vpop.eup %2928 }
 0x810   :  { %v2327_v42 = vmul.f32 1.0614054, %v2929_v41 }
 0x811   :  { %v2931_v52 = vpop.eup %2930 }
 0x812   :  { %v2328_v44 = vadd.f32 -1.4531521, %v2327_v42 }
 0x814   :  { %v2329_v47 = vmul.f32 %v2929_v41, %v2328_v44 }
 0x816   :  { %v2330_v45 = vadd.f32 1.4214138, %v2329_v47 }
 0x818   :  { %v2331_v46 = vmul.f32 %v2929_v41, %v2330_v45 }
 0x81a   :  { %v2332_v48 = vadd.f32 -0.28449672, %v2331_v46 }
 0x81c   :  { %v2333_v49 = vmul.f32 %v2929_v41, %v2332_v48 }
 0x81e   :  { %v2334_v50 = vadd.f32 0.2548296, %v2333_v49 }
 0x820   :  { %v2335_v51 = vmul.f32 %v2929_v41, %v2334_v50 }
 0x822   :  { %v2340_v53 = vmul.f32 %v2931_v52, %v2335_v51 }
 0x824   :  { %v2341_v54 = vsub.f32 1.0, %v2340_v53 }
 0x826   :  { %v2342_v57 = vmul.f32 %v2341_v54, %v2321_v56 }
 0x828   :  { %v2343_v59 = vadd.f32 1.0, %v2342_v57 }
 0x82a   :  { %v2344_v60 = vmul.f32 %v2343_v59, %v2318_v58 }
 0x82c   :  { %2899 = vmatmul.mubr.msk.f32.vlgmr.msra.gmra.mxu1 %vm2360_vm14, %v2344_v60 }
 0x8ec   :  { %v2430_v62 = vpop.f32.mrf.mxu1 }
 0x8ed   :  { %v2431_v63 = vadd.f32 %v2577_v61, %v2430_v62 }
 0x8ee   :  { %v2900_v0 = vpop.f32.mrf.mxu1 }
 0x8ef   :  { %v2434_v1 = vadd.f32 %v2431_v63, %v3624_v24 }
 0x8f1   :  { %v2437_v2 = vsel %vm169_vm1, %v2434_v1, 0.0 }
 0x8f2   :  { %2438 = vadd.xlane.f32.xlu0 %v2437_v2 }
 0x97b   :  { %v2439_v4 = vpop.xlane.xlu0 %2438 }
 0x97c   :  { %v2440_v5 = vmul.f32 0.03125, %v2439_v4 }
 0x97e   :  { %v2441_v6 = vsub.f32 %v2434_v1, %v2440_v5 }
 0x980   :  { %v2442_v7 = vmul.f32 %v2441_v6, %v2441_v6 }
 0x982   :  { %v2443_v8 = vsel %vm169_vm1, %v2442_v7, 0.0 }
 0x983   :  { %2444 = vadd.xlane.f32.xlu1 %v2443_v8 }
 0xa0c   :  { %v2445_v9 = vpop.xlane.xlu1 %2444 }
 0xa0d   :  { %v2446_v10 = vmul.f32 0.03125, %v2445_v9 }
 0xa0f   :  { %v2447_v11 = vadd.f32 1e-12, %v2446_v10 }
 0xa11   :  { %2932 = vrsqrt.f32 %v2447_v11 }
 0xa1e   :  { %v2933_v12 = vpop.eup %2932 }
 0xa1f   :  { %v2449_v13 = vmul.f32 %v2933_v12, %v2441_v6 }
 0xa21   :  { %v2456_v15 = vmul.f32 %v2579_v3, %v2449_v13 }
 0xa23   :  { %v2463_v16 = vadd.f32 %v2580_v14, %v2456_v15 }
 0xa25   :  { %2464 = vst.msk [vmem:[#allocation2] sm:$0xff] %vm169_vm1, %v2463_v16 }
 0xa2c   :  { %v2468_v17 = vld [vmem:[#allocation2 + $0x1] sm:$0x3f] }
 0xa2d   :  { %2470 = vst.msk [vmem:[#allocation8] sm:$0x3f] %vm2469_vm15, %v2468_v17 }
 0xa2e   :  { %2981 = shalt.err (!%p2978_p5)
}
 0xa2f   :  { %s3719_s1 = sld [smem:[#allocation20_spill]] }
 0xa35   :  { %2480 = dma.vmem_to_hbm [thread:$0]  %s2478_s22, 128, %s3719_s1, [#allocation9]  }
 0xa36   :  { %2992 = dma.done.wait [#allocation9], 128  }
 0xa37   :  { %2993 = vsyncadd [#allocation9], 4294967168 }
 0xa38   :  { %2484 = vsyncpa [#allocation9], 1 }

</bundles_post_ra>
